<compile_context>
chip_gen: v7x
topology: tpu7x:2x2x1
jax: 0.10.0
libtpu: 0.0.40
codegen_flags: <defaults>
</compile_context>

<pallas_src>
import math

import jax
import jax.numpy as jnp
from jax.experimental import pallas as pl
from jax.experimental.pallas import tpu as pltpu


# ----------------------------- Pallas kernel ------------------------------ #
def he_et_al_kernel(z_ref, w1g_ref, b1_ref, wc2_ref, bc2_ref, wc3_ref, bc3_ref,
                    w4s_ref, b4s_ref, wfc_ref, bfc_ref, out_ref,
                    apad_ref, stack_ref, y4_ref, fcs_ref):
    tb = out_ref.shape[2]                 # samples per grid step (lane minor)
    w1tb = stack_ref.shape[1]             # W1 * TB
    w1 = w1tb // tb                       # spectral length after conv1
    w4 = w1 - 2                           # spectral length after conv4
    w4tb = w4 * tb

    # zero the 5-block halos of the activation buffer (needed for the 'same'
    # padded multi-scale convs).  This is 2 x (16, 5*TB) stores only.
    halo = jnp.zeros((16, 5 * tb), jnp.float32)
    apad_ref[:, :5 * tb] = halo
    apad_ref[:, (5 + w1) * tb:] = halo

    # ---- conv1: (3,3,11) stride (1,1,3) on a 3x3xC patch --------------------
    # residue-mod-3 layout: z[r*9+sp, q*TB+s] = x[s, sp, 3q+r]  (rows 27..31 = 0)
    # 4 shift-groups stacked -> one (16,128) @ (128, W1*TB) matmul.
    z = z_ref[0]                                               # (32, (W1+3)*TB)
    for d in range(4):
        stack_ref[32 * d:32 * (d + 1), :] = z[:, d * tb:d * tb + w1tb]
    a1 = jnp.dot(w1g_ref[...], stack_ref[:128, :],
                 preferred_element_type=jnp.float32) + b1_ref[...]
    apad_ref[:, 5 * tb:5 * tb + w1tb] = jnp.maximum(a1, 0.0)   # (16, W1*TB)

    # ---- multi-scale blocks (conv2_* / conv3_*), each = one 11-tap conv -----
    # 11 lane-shifted copies stacked -> one (16,176) @ (176, W1*TB) matmul.
    def multiscale(wc_ref, bc_ref):
        for t in range(11):
            stack_ref[16 * t:16 * (t + 1), :] = \
                apad_ref[:, t * tb:t * tb + w1tb]
        a = jnp.dot(wc_ref[...], stack_ref[...],
                    preferred_element_type=jnp.float32) + bc_ref[...]
        apad_ref[:, 5 * tb:5 * tb + w1tb] = jnp.maximum(a, 0.0)

    multiscale(wc2_ref, bc2_ref)
    multiscale(wc3_ref, bc3_ref)

    # ---- conv4 (2,2,3) pad (1,1,0) + relu: one (64,48) @ (48, W4*TB) matmul --
    # the 4 (d,h) output slices are the 4 row-blocks of the (64, .) result.
    for t in range(3):
        stack_ref[16 * t:16 * (t + 1), :w4tb] = \
            apad_ref[:, (5 + t) * tb:(5 + t) * tb + w4tb]
    y = jnp.dot(w4s_ref[...], stack_ref[:48, :w4tb],
                preferred_element_type=jnp.float32) + b4s_ref[...]
    y4_ref[...] = jnp.maximum(y, 0.0)                          # (64, W4*TB)

    # ---- flatten + fc: restack to (64*W4, TB) -> one GEMM -------------------
    for w in range(w4):
        fcs_ref[64 * w:64 * (w + 1), :] = y4_ref[:, w * tb:(w + 1) * tb]
    # TODO(synk): nn.Dropout(p=0.6) treated as identity (inference semantics).
    logits = jnp.dot(wfc_ref[...], fcs_ref[...],
                     preferred_element_type=jnp.float32) + bfc_ref[...]
    out_ref[...] = logits[None, :, :]                          # (1, ncls, TB)


# ------------------------------ JAX wrapper -------------------------------- #
def he_et_al_forward(x, params, n_classes, tb=128):
    """x: (B, 1, 3, 3, C) float32 (NCDHW with patch=3)."""
    B, _, P, _, C = x.shape
    assert P == 3
    W1 = (C - 11) // 3 + 1
    W4 = W1 - 2
    Q = W1 + 3                              # residue-plane width needed

    ntiles = -(-B // tb)
    Bp = ntiles * tb

    # -------- input restructuring (cheap reshapes, no im2col inflation) -----
    xs = x[:, 0].reshape(B, 9, C)
    if Bp != B:
        xs = jnp.pad(xs, ((0, Bp - B), (0, 0), (0, 0)))
    if C < 3 * Q:
        xs = jnp.pad(xs, ((0, 0), (0, 0), (0, 3 * Q - C)))
    elif C > 3 * Q:
        xs = xs[:, :, :3 * Q]
    xr = xs.reshape(Bp, 9, Q, 3)                               # [b, sp, q, r]
    xr = jnp.transpose(xr, (3, 1, 2, 0))                       # (3, 9, Q, Bp)
    xr = xr.reshape(27, Q, ntiles, tb)
    z = jnp.transpose(xr, (2, 0, 1, 3)).reshape(ntiles, 27, Q * tb)
    z = jnp.pad(z, ((0, 0), (0, 5), (0, 0)))                   # (ntiles, 32, Q*TB)

    # -------- weight reorganisation (no FLOPs at run time) -------------------
    # conv1 -> (16, 128): column d*32 + r*9 + sp = w1[o, sp, 3d+r]
    w1r = params['w1'].reshape(16, 9, 11)
    w1p = jnp.pad(w1r, ((0, 0), (0, 0), (0, 1))).reshape(16, 9, 4, 3)
    w1g = jnp.transpose(w1p, (0, 2, 3, 1)).reshape(16, 4, 27)
    w1g = jnp.pad(w1g, ((0, 0), (0, 0), (0, 5))).reshape(16, 128)
    b1c = params['b1'].reshape(16, 1)

    def combine(ws, bs):
        # sum of centered 1x1x{1,3,5,11} 'same' convs == single 11-tap conv
        wc = jnp.zeros((16, 16, 11), jnp.float32)
        for w in ws:
            k = w.shape[-1]
            off = (11 - k) // 2
            wc = wc.at[:, :, off:off + k].add(w.reshape(16, 16, k))
        wcs = jnp.transpose(wc, (0, 2, 1)).reshape(16, 176)    # col = t*16 + i
        return wcs, (bs[0] + bs[1] + bs[2] + bs[3]).reshape(16, 1)

    wc2, bc2 = combine(params['w2'], params['b2'])
    wc3, bc3 = combine(params['w3'], params['b3'])

    # conv4 -> (64, 48): row (d*2+h)*16 + o, col t*16 + i, (kd,kh) = (1-d,1-h)
    w4f = params['w4'][:, :, ::-1, ::-1, :]                    # (o,i,d,h,t)
    w4s = jnp.transpose(w4f, (2, 3, 0, 4, 1)).reshape(64, 48)
    b4s = jnp.tile(params['b4'].reshape(1, 16), (4, 1)).reshape(64, 1)

    # fc -> (n_classes, W4*64): col w4*64 + (d*2+h)*16 + o
    wfc_r = params['wfc'].reshape(n_classes, 16, 2, 2, W4)     # (cls,o,d,h,w4)
    wfc_s = jnp.transpose(wfc_r, (0, 4, 2, 3, 1)).reshape(n_classes, W4 * 64)
    bfc = params['bfc'].reshape(n_classes, 1)

    out = pl.pallas_call(
        he_et_al_kernel,
        out_shape=jax.ShapeDtypeStruct((ntiles, n_classes, tb), jnp.float32),
        grid_spec=pltpu.PrefetchScalarGridSpec(
            num_scalar_prefetch=0,
            grid=(ntiles,),
            in_specs=[
                pl.BlockSpec((1, 32, Q * tb), lambda g: (g, 0, 0)),      # z
                pl.BlockSpec((16, 128), lambda g: (0, 0)),               # w1g
                pl.BlockSpec((16, 1), lambda g: (0, 0)),                 # b1
                pl.BlockSpec((16, 176), lambda g: (0, 0)),               # wc2
                pl.BlockSpec((16, 1), lambda g: (0, 0)),                 # bc2
                pl.BlockSpec((16, 176), lambda g: (0, 0)),               # wc3
                pl.BlockSpec((16, 1), lambda g: (0, 0)),                 # bc3
                pl.BlockSpec((64, 48), lambda g: (0, 0)),                # w4s
                pl.BlockSpec((64, 1), lambda g: (0, 0)),                 # b4s
                pl.BlockSpec((n_classes, W4 * 64), lambda g: (0, 0)),    # wfc
                pl.BlockSpec((n_classes, 1), lambda g: (0, 0)),          # bfc
            ],
            out_specs=pl.BlockSpec((1, n_classes, tb), lambda g: (g, 0, 0)),
            scratch_shapes=[
                pltpu.VMEM((16, (W1 + 10) * tb), jnp.float32),   # act + halo
                pltpu.VMEM((176, W1 * tb), jnp.float32),         # tap stack
                pltpu.VMEM((64, W4 * tb), jnp.float32),          # conv4 out
                pltpu.VMEM((W4 * 64, tb), jnp.float32),          # fc features
            ],
        ),
        compiler_params=pltpu.CompilerParams(
            dimension_semantics=("parallel",),
            vmem_limit_bytes=32 * 1024 * 1024),
    )(z, w1g, b1c, wc2, bc2, wc3, bc3, w4s, b4s, wfc_s, bfc)

    out = jnp.transpose(out, (0, 2, 1)).reshape(Bp, n_classes)
    return out[:B]                                             # (B, n_classes)


# --------------------------- reference (pure JAX) -------------------------- #
def _conv3d(x, w, b, stride, padding):
    out = jax.lax.conv_general_dilated(
        x, w, window_strides=stride, padding=padding,
        dimension_numbers=('NCDHW', 'OIDHW', 'NCDHW'),
        precision=jax.lax.Precision.HIGHEST)
    return out + b.reshape(1, -1, 1, 1, 1)


def reference_forward(x, p):
    a = jax.nn.relu(_conv3d(x, p['w1'], p['b1'], (1, 1, 3),
                            [(0, 0), (0, 0), (0, 0)]))

    def ms(a, ws, bs):
        outs = []
        for w, b in zip(ws, bs):
            k = w.shape[-1]
            pad = (k - 1) // 2
            outs.append(_conv3d(a, w, b, (1, 1, 1),
                                [(0, 0), (0, 0), (pad, pad)]))
        return jax.nn.relu(outs[0] + outs[1] + outs[2] + outs[3])

    a = ms(a, p['w2'], p['b2'])
    a = ms(a, p['w3'], p['b3'])
    a = jax.nn.relu(_conv3d(a, p['w4'], p['b4'], (1, 1, 1),
                            [(1, 1), (1, 1), (0, 0)]))
    flat = a.reshape(x.shape[0], -1)
    return jnp.dot(flat, p['wfc'].T,
                   precision=jax.lax.Precision.HIGHEST) + p['bfc']


# ----------------------------- param init --------------------------------- #
def init_params(key, input_channels, n_classes):
    W1 = (input_channels - 11) // 3 + 1
    W4 = W1 - 2
    F = 16 * 2 * 2 * W4
    keys = iter(jax.random.split(key, 40))

    def ku(shape):
        fan_in = 1
        for s in shape[1:]:
            fan_in *= s
        bound = math.sqrt(6.0 / fan_in)
        return jax.random.uniform(next(keys), shape, jnp.float32, -bound, bound)

    def bias(shape, fan_in):
        bound = 1.0 / math.sqrt(fan_in)
        return jax.random.uniform(next(keys), shape, jnp.float32, -bound, bound)

    p = {}
    p['w1'] = ku((16, 1, 3, 3, 11));           p['b1'] = bias((16,), 99)
    p['w2'] = [ku((16, 16, 1, 1, k)) for k in (1, 3, 5, 11)]
    p['b2'] = [bias((16,), 16 * k) for k in (1, 3, 5, 11)]
    p['w3'] = [ku((16, 16, 1, 1, k)) for k in (1, 3, 5, 11)]
    p['b3'] = [bias((16,), 16 * k) for k in (1, 3, 5, 11)]
    p['w4'] = ku((16, 16, 2, 2, 3));           p['b4'] = bias((16,), 16 * 12)
    p['wfc'] = ku((n_classes, F));             p['bfc'] = bias((n_classes,), F)
    return p


if __name__ == "__main__":
    INPUT_CHANNELS = 32   # small stand-in for the paper's 220 spectral bands
    N_CLASSES = 16
    PATCH = 3
    BATCH = 256           # 2 grid steps of 128 lane-batched samples

    key = jax.random.PRNGKey(0)
    kx, kp = jax.random.split(key)
    x = jax.random.normal(kx, (BATCH, 1, PATCH, PATCH, INPUT_CHANNELS),
                          jnp.float32)
    params = init_params(kp, INPUT_CHANNELS, N_CLASSES)

    out = jax.block_until_ready(he_et_al_forward(x, params, N_CLASSES))
    ref = jax.block_until_ready(reference_forward(x, params))

    assert out.shape == (BATCH, N_CLASSES)
    if not jnp.allclose(out, ref, rtol=2e-3, atol=2e-2):
        raise AssertionError(
            f"kernel/reference mismatch, max |diff| = {jnp.max(jnp.abs(out - ref))}")
    print("KERNEL_OK")
</pallas_src>

<mosaic_0001>
module attributes {stable_mosaic.version = 11 : i64} {
  func.func @he_et_al_kernel(%arg0: i32, %arg1: memref<1x32x1408xf32, #tpu.memory_space<vmem>>, %arg2: memref<16x128xf32, #tpu.memory_space<vmem>>, %arg3: memref<16x1xf32, #tpu.memory_space<vmem>>, %arg4: memref<16x176xf32, #tpu.memory_space<vmem>>, %arg5: memref<16x1xf32, #tpu.memory_space<vmem>>, %arg6: memref<16x176xf32, #tpu.memory_space<vmem>>, %arg7: memref<16x1xf32, #tpu.memory_space<vmem>>, %arg8: memref<64x48xf32, #tpu.memory_space<vmem>>, %arg9: memref<64x1xf32, #tpu.memory_space<vmem>>, %arg10: memref<16x384xf32, #tpu.memory_space<vmem>>, %arg11: memref<16x1xf32, #tpu.memory_space<vmem>>, %arg12: memref<1x16x128xf32, #tpu.memory_space<vmem>>, %arg13: memref<16x2304xf32, #tpu.memory_space<vmem>>, %arg14: memref<176x1024xf32, #tpu.memory_space<vmem>>, %arg15: memref<64x768xf32, #tpu.memory_space<vmem>>, %arg16: memref<384x128xf32, #tpu.memory_space<vmem>>) attributes {dimension_semantics = [#tpu.dimension_semantics<parallel>], iteration_bounds = array<i64: 2>, scalar_prefetch = 0 : i64, scratch_operands = 4 : i64, tpu.core_type = #tpu.core_type<tc>, window_params = [{transform_indices = @transform_0, window_bounds = array<i64: 1, 32, 1408>}, {pipeline_mode = #tpu.pipeline_mode<synchronous>, transform_indices = @transform_1, window_bounds = array<i64: 16, 128>}, {pipeline_mode = #tpu.pipeline_mode<synchronous>, transform_indices = @transform_2, window_bounds = array<i64: 16, 1>}, {pipeline_mode = #tpu.pipeline_mode<synchronous>, transform_indices = @transform_3, window_bounds = array<i64: 16, 176>}, {pipeline_mode = #tpu.pipeline_mode<synchronous>, transform_indices = @transform_4, window_bounds = array<i64: 16, 1>}, {pipeline_mode = #tpu.pipeline_mode<synchronous>, transform_indices = @transform_5, window_bounds = array<i64: 16, 176>}, {pipeline_mode = #tpu.pipeline_mode<synchronous>, transform_indices = @transform_6, window_bounds = array<i64: 16, 1>}, {pipeline_mode = #tpu.pipeline_mode<synchronous>, transform_indices = @transform_7, window_bounds = array<i64: 64, 48>}, {pipeline_mode = #tpu.pipeline_mode<synchronous>, transform_indices = @transform_8, window_bounds = array<i64: 64, 1>}, {pipeline_mode = #tpu.pipeline_mode<synchronous>, transform_indices = @transform_9, window_bounds = array<i64: 16, 384>}, {pipeline_mode = #tpu.pipeline_mode<synchronous>, transform_indices = @transform_10, window_bounds = array<i64: 16, 1>}, {transform_indices = @transform_11, window_bounds = array<i64: 1, 16, 128>}]} {
    %cst = arith.constant 0.000000e+00 : f32
    %0 = vector.broadcast %cst : f32 to vector<16x640xf32>
    %c0 = arith.constant 0 : index
    %c0_0 = arith.constant 0 : index
    %1 = vector.load %arg13[%c0, %c0_0] : memref<16x2304xf32, #tpu.memory_space<vmem>>, vector<16x640xf32>
    tpu.vector_store %arg13[%c0, %c0_0], %0 {strides = array<i32>} : memref<16x2304xf32, #tpu.memory_space<vmem>>, vector<16x640xf32>,
    %c0_1 = arith.constant 0 : index
    %c1664 = arith.constant 1664 : index
    %2 = vector.load %arg13[%c0_1, %c1664] : memref<16x2304xf32, #tpu.memory_space<vmem>>, vector<16x640xf32>
    tpu.vector_store %arg13[%c0_1, %c1664], %0 {strides = array<i32>} : memref<16x2304xf32, #tpu.memory_space<vmem>>, vector<16x640xf32>,
    %c0_2 = arith.constant 0 : index
    %c0_3 = arith.constant 0 : index
    %c0_4 = arith.constant 0 : index
    %3 = vector.load %arg1[%c0_2, %c0_3, %c0_4] : memref<1x32x1408xf32, #tpu.memory_space<vmem>>, vector<1x32x1408xf32>
    %4 = vector.shape_cast %3 : vector<1x32x1408xf32> to vector<32x1408xf32>
    %5 = vector.extract_strided_slice %4 {offsets = [0, 0], sizes = [32, 1024], strides = [1, 1]} : vector<32x1408xf32> to vector<32x1024xf32>
    %c0_5 = arith.constant 0 : index
    %c0_6 = arith.constant 0 : index
    %6 = vector.load %arg14[%c0_5, %c0_6] : memref<176x1024xf32, #tpu.memory_space<vmem>>, vector<32x1024xf32>
    tpu.vector_store %arg14[%c0_5, %c0_6], %5 {strides = array<i32>} : memref<176x1024xf32, #tpu.memory_space<vmem>>, vector<32x1024xf32>,
    %7 = vector.extract_strided_slice %4 {offsets = [0, 128], sizes = [32, 1024], strides = [1, 1]} : vector<32x1408xf32> to vector<32x1024xf32>
    %c32 = arith.constant 32 : index
    %c0_7 = arith.constant 0 : index
    %8 = vector.load %arg14[%c32, %c0_7] : memref<176x1024xf32, #tpu.memory_space<vmem>>, vector<32x1024xf32>
    tpu.vector_store %arg14[%c32, %c0_7], %7 {strides = array<i32>} : memref<176x1024xf32, #tpu.memory_space<vmem>>, vector<32x1024xf32>,
    %9 = vector.extract_strided_slice %4 {offsets = [0, 256], sizes = [32, 1024], strides = [1, 1]} : vector<32x1408xf32> to vector<32x1024xf32>
    %c64 = arith.constant 64 : index
    %c0_8 = arith.constant 0 : index
    %10 = vector.load %arg14[%c64, %c0_8] : memref<176x1024xf32, #tpu.memory_space<vmem>>, vector<32x1024xf32>
    tpu.vector_store %arg14[%c64, %c0_8], %9 {strides = array<i32>} : memref<176x1024xf32, #tpu.memory_space<vmem>>, vector<32x1024xf32>,
    %11 = vector.extract_strided_slice %4 {offsets = [0, 384], sizes = [32, 1024], strides = [1, 1]} : vector<32x1408xf32> to vector<32x1024xf32>
    %c96 = arith.constant 96 : index
    %c0_9 = arith.constant 0 : index
    %12 = vector.load %arg14[%c96, %c0_9] : memref<176x1024xf32, #tpu.memory_space<vmem>>, vector<32x1024xf32>
    tpu.vector_store %arg14[%c96, %c0_9], %11 {strides = array<i32>} : memref<176x1024xf32, #tpu.memory_space<vmem>>, vector<32x1024xf32>,
    %c0_10 = arith.constant 0 : index
    %c0_11 = arith.constant 0 : index
    %13 = vector.load %arg2[%c0_10, %c0_11] : memref<16x128xf32, #tpu.memory_space<vmem>>, vector<16x128xf32>
    %c0_12 = arith.constant 0 : index
    %c0_13 = arith.constant 0 : index
    %14 = vector.load %arg14[%c0_12, %c0_13] : memref<176x1024xf32, #tpu.memory_space<vmem>>, vector<128x1024xf32>
    %cst_14 = arith.constant dense<0.000000e+00> : vector<16x1024xf32>
    %15 = tpu.matmul %13, %14, %cst_14 {dimension_numbers = #tpu.dot_dimension_numbers<[1], [0], [0], [1], [0, 0, 1, 1], [], []>} : vector<16x128xf32>, vector<128x1024xf32>, vector<16x1024xf32> -> vector<16x1024xf32>
    %c0_15 = arith.constant 0 : index
    %c0_16 = arith.constant 0 : index
    %16 = vector.load %arg3[%c0_15, %c0_16] : memref<16x1xf32, #tpu.memory_space<vmem>>, vector<16x1xf32>
    %17 = vector.broadcast %16 : vector<16x1xf32> to vector<16x1024xf32>
    %18 = arith.addf %15, %17 : vector<16x1024xf32>
    %cst_17 = arith.constant 0.000000e+00 : f32
    %19 = vector.broadcast %cst_17 : f32 to vector<16x1024xf32>
    %20 = arith.maximumf %18, %19 : vector<16x1024xf32>
    %c0_18 = arith.constant 0 : index
    %c640 = arith.constant 640 : index
    %21 = vector.load %arg13[%c0_18, %c640] : memref<16x2304xf32, #tpu.memory_space<vmem>>, vector<16x1024xf32>
    tpu.vector_store %arg13[%c0_18, %c640], %20 {strides = array<i32>} : memref<16x2304xf32, #tpu.memory_space<vmem>>, vector<16x1024xf32>,
    %c0_19 = arith.constant 0 : index
    %c0_20 = arith.constant 0 : index
    %22 = vector.load %arg13[%c0_19, %c0_20] : memref<16x2304xf32, #tpu.memory_space<vmem>>, vector<16x1024xf32>
    %c0_21 = arith.constant 0 : index
    %c0_22 = arith.constant 0 : index
    %23 = vector.load %arg14[%c0_21, %c0_22] : memref<176x1024xf32, #tpu.memory_space<vmem>>, vector<16x1024xf32>
    tpu.vector_store %arg14[%c0_21, %c0_22], %22 {strides = array<i32>} : memref<176x1024xf32, #tpu.memory_space<vmem>>, vector<16x1024xf32>,
    %c0_23 = arith.constant 0 : index
    %c128 = arith.constant 128 : index
    %24 = vector.load %arg13[%c0_23, %c128] : memref<16x2304xf32, #tpu.memory_space<vmem>>, vector<16x1024xf32>
    %c16 = arith.constant 16 : index
    %c0_24 = arith.constant 0 : index
    %25 = vector.load %arg14[%c16, %c0_24] : memref<176x1024xf32, #tpu.memory_space<vmem>>, vector<16x1024xf32>
    tpu.vector_store %arg14[%c16, %c0_24], %24 {strides = array<i32>} : memref<176x1024xf32, #tpu.memory_space<vmem>>, vector<16x1024xf32>,
    %c0_25 = arith.constant 0 : index
    %c256 = arith.constant 256 : index
    %26 = vector.load %arg13[%c0_25, %c256] : memref<16x2304xf32, #tpu.memory_space<vmem>>, vector<16x1024xf32>
    %c32_26 = arith.constant 32 : index
    %c0_27 = arith.constant 0 : index
    %27 = vector.load %arg14[%c32_26, %c0_27] : memref<176x1024xf32, #tpu.memory_space<vmem>>, vector<16x1024xf32>
    tpu.vector_store %arg14[%c32_26, %c0_27], %26 {strides = array<i32>} : memref<176x1024xf32, #tpu.memory_space<vmem>>, vector<16x1024xf32>,
    %c0_28 = arith.constant 0 : index
    %c384 = arith.constant 384 : index
    %28 = vector.load %arg13[%c0_28, %c384] : memref<16x2304xf32, #tpu.memory_space<vmem>>, vector<16x1024xf32>
    %c48 = arith.constant 48 : index
    %c0_29 = arith.constant 0 : index
    %29 = vector.load %arg14[%c48, %c0_29] : memref<176x1024xf32, #tpu.memory_space<vmem>>, vector<16x1024xf32>
    tpu.vector_store %arg14[%c48, %c0_29], %28 {strides = array<i32>} : memref<176x1024xf32, #tpu.memory_space<vmem>>, vector<16x1024xf32>,
    %c0_30 = arith.constant 0 : index
    %c512 = arith.constant 512 : index
    %30 = vector.load %arg13[%c0_30, %c512] : memref<16x2304xf32, #tpu.memory_space<vmem>>, vector<16x1024xf32>
    %c64_31 = arith.constant 64 : index
    %c0_32 = arith.constant 0 : index
    %31 = vector.load %arg14[%c64_31, %c0_32] : memref<176x1024xf32, #tpu.memory_space<vmem>>, vector<16x1024xf32>
    tpu.vector_store %arg14[%c64_31, %c0_32], %30 {strides = array<i32>} : memref<176x1024xf32, #tpu.memory_space<vmem>>, vector<16x1024xf32>,
    %c0_33 = arith.constant 0 : index
    %c640_34 = arith.constant 640 : index
    %32 = vector.load %arg13[%c0_33, %c640_34] : memref<16x2304xf32, #tpu.memory_space<vmem>>, vector<16x1024xf32>
    %c80 = arith.constant 80 : index
    %c0_35 = arith.constant 0 : index
    %33 = vector.load %arg14[%c80, %c0_35] : memref<176x1024xf32, #tpu.memory_space<vmem>>, vector<16x1024xf32>
    tpu.vector_store %arg14[%c80, %c0_35], %32 {strides = array<i32>} : memref<176x1024xf32, #tpu.memory_space<vmem>>, vector<16x1024xf32>,
    %c0_36 = arith.constant 0 : index
    %c768 = arith.constant 768 : index
    %34 = vector.load %arg13[%c0_36, %c768] : memref<16x2304xf32, #tpu.memory_space<vmem>>, vector<16x1024xf32>
    %c96_37 = arith.constant 96 : index
    %c0_38 = arith.constant 0 : index
    %35 = vector.load %arg14[%c96_37, %c0_38] : memref<176x1024xf32, #tpu.memory_space<vmem>>, vector<16x1024xf32>
    tpu.vector_store %arg14[%c96_37, %c0_38], %34 {strides = array<i32>} : memref<176x1024xf32, #tpu.memory_space<vmem>>, vector<16x1024xf32>,
    %c0_39 = arith.constant 0 : index
    %c896 = arith.constant 896 : index
    %36 = vector.load %arg13[%c0_39, %c896] : memref<16x2304xf32, #tpu.memory_space<vmem>>, vector<16x1024xf32>
    %c112 = arith.constant 112 : index
    %c0_40 = arith.constant 0 : index
    %37 = vector.load %arg14[%c112, %c0_40] : memref<176x1024xf32, #tpu.memory_space<vmem>>, vector<16x1024xf32>
    tpu.vector_store %arg14[%c112, %c0_40], %36 {strides = array<i32>} : memref<176x1024xf32, #tpu.memory_space<vmem>>, vector<16x1024xf32>,
    %c0_41 = arith.constant 0 : index
    %c1024 = arith.constant 1024 : index
    %38 = vector.load %arg13[%c0_41, %c1024] : memref<16x2304xf32, #tpu.memory_space<vmem>>, vector<16x1024xf32>
    %c128_42 = arith.constant 128 : index
    %c0_43 = arith.constant 0 : index
    %39 = vector.load %arg14[%c128_42, %c0_43] : memref<176x1024xf32, #tpu.memory_space<vmem>>, vector<16x1024xf32>
    tpu.vector_store %arg14[%c128_42, %c0_43], %38 {strides = array<i32>} : memref<176x1024xf32, #tpu.memory_space<vmem>>, vector<16x1024xf32>,
    %c0_44 = arith.constant 0 : index
    %c1152 = arith.constant 1152 : index
    %40 = vector.load %arg13[%c0_44, %c1152] : memref<16x2304xf32, #tpu.memory_space<vmem>>, vector<16x1024xf32>
    %c144 = arith.constant 144 : index
    %c0_45 = arith.constant 0 : index
    %41 = vector.load %arg14[%c144, %c0_45] : memref<176x1024xf32, #tpu.memory_space<vmem>>, vector<16x1024xf32>
    tpu.vector_store %arg14[%c144, %c0_45], %40 {strides = array<i32>} : memref<176x1024xf32, #tpu.memory_space<vmem>>, vector<16x1024xf32>,
    %c0_46 = arith.constant 0 : index
    %c1280 = arith.constant 1280 : index
    %42 = vector.load %arg13[%c0_46, %c1280] : memref<16x2304xf32, #tpu.memory_space<vmem>>, vector<16x1024xf32>
    %c160 = arith.constant 160 : index
    %c0_47 = arith.constant 0 : index
    %43 = vector.load %arg14[%c160, %c0_47] : memref<176x1024xf32, #tpu.memory_space<vmem>>, vector<16x1024xf32>
    tpu.vector_store %arg14[%c160, %c0_47], %42 {strides = array<i32>} : memref<176x1024xf32, #tpu.memory_space<vmem>>, vector<16x1024xf32>,
    %c0_48 = arith.constant 0 : index
    %c0_49 = arith.constant 0 : index
    %44 = vector.load %arg4[%c0_48, %c0_49] : memref<16x176xf32, #tpu.memory_space<vmem>>, vector<16x176xf32>
    %c0_50 = arith.constant 0 : index
    %c0_51 = arith.constant 0 : index
    %45 = vector.load %arg14[%c0_50, %c0_51] : memref<176x1024xf32, #tpu.memory_space<vmem>>, vector<176x1024xf32>
    %cst_52 = arith.constant dense<0.000000e+00> : vector<16x1024xf32>
    %46 = tpu.matmul %44, %45, %cst_52 {dimension_numbers = #tpu.dot_dimension_numbers<[1], [0], [0], [1], [0, 0, 1, 1], [], []>} : vector<16x176xf32>, vector<176x1024xf32>, vector<16x1024xf32> -> vector<16x1024xf32>
    %c0_53 = arith.constant 0 : index
    %c0_54 = arith.constant 0 : index
    %47 = vector.load %arg5[%c0_53, %c0_54] : memref<16x1xf32, #tpu.memory_space<vmem>>, vector<16x1xf32>
    %48 = vector.broadcast %47 : vector<16x1xf32> to vector<16x1024xf32>
    %49 = arith.addf %46, %48 : vector<16x1024xf32>
    %cst_55 = arith.constant 0.000000e+00 : f32
    %50 = vector.broadcast %cst_55 : f32 to vector<16x1024xf32>
    %51 = arith.maximumf %49, %50 : vector<16x1024xf32>
    %c0_56 = arith.constant 0 : index
    %c640_57 = arith.constant 640 : index
    %52 = vector.load %arg13[%c0_56, %c640_57] : memref<16x2304xf32, #tpu.memory_space<vmem>>, vector<16x1024xf32>
    tpu.vector_store %arg13[%c0_56, %c640_57], %51 {strides = array<i32>} : memref<16x2304xf32, #tpu.memory_space<vmem>>, vector<16x1024xf32>,
    %c0_58 = arith.constant 0 : index
    %c0_59 = arith.constant 0 : index
    %53 = vector.load %arg13[%c0_58, %c0_59] : memref<16x2304xf32, #tpu.memory_space<vmem>>, vector<16x1024xf32>
    %c0_60 = arith.constant 0 : index
    %c0_61 = arith.constant 0 : index
    %54 = vector.load %arg14[%c0_60, %c0_61] : memref<176x1024xf32, #tpu.memory_space<vmem>>, vector<16x1024xf32>
    tpu.vector_store %arg14[%c0_60, %c0_61], %53 {strides = array<i32>} : memref<176x1024xf32, #tpu.memory_space<vmem>>, vector<16x1024xf32>,
    %c0_62 = arith.constant 0 : index
    %c128_63 = arith.constant 128 : index
    %55 = vector.load %arg13[%c0_62, %c128_63] : memref<16x2304xf32, #tpu.memory_space<vmem>>, vector<16x1024xf32>
    %c16_64 = arith.constant 16 : index
    %c0_65 = arith.constant 0 : index
    %56 = vector.load %arg14[%c16_64, %c0_65] : memref<176x1024xf32, #tpu.memory_space<vmem>>, vector<16x1024xf32>
    tpu.vector_store %arg14[%c16_64, %c0_65], %55 {strides = array<i32>} : memref<176x1024xf32, #tpu.memory_space<vmem>>, vector<16x1024xf32>,
    %c0_66 = arith.constant 0 : index
    %c256_67 = arith.constant 256 : index
    %57 = vector.load %arg13[%c0_66, %c256_67] : memref<16x2304xf32, #tpu.memory_space<vmem>>, vector<16x1024xf32>
    %c32_68 = arith.constant 32 : index
    %c0_69 = arith.constant 0 : index
    %58 = vector.load %arg14[%c32_68, %c0_69] : memref<176x1024xf32, #tpu.memory_space<vmem>>, vector<16x1024xf32>
    tpu.vector_store %arg14[%c32_68, %c0_69], %57 {strides = array<i32>} : memref<176x1024xf32, #tpu.memory_space<vmem>>, vector<16x1024xf32>,
    %c0_70 = arith.constant 0 : index
    %c384_71 = arith.constant 384 : index
    %59 = vector.load %arg13[%c0_70, %c384_71] : memref<16x2304xf32, #tpu.memory_space<vmem>>, vector<16x1024xf32>
    %c48_72 = arith.constant 48 : index
    %c0_73 = arith.constant 0 : index
    %60 = vector.load %arg14[%c48_72, %c0_73] : memref<176x1024xf32, #tpu.memory_space<vmem>>, vector<16x1024xf32>
    tpu.vector_store %arg14[%c48_72, %c0_73], %59 {strides = array<i32>} : memref<176x1024xf32, #tpu.memory_space<vmem>>, vector<16x1024xf32>,
    %c0_74 = arith.constant 0 : index
    %c512_75 = arith.constant 512 : index
    %61 = vector.load %arg13[%c0_74, %c512_75] : memref<16x2304xf32, #tpu.memory_space<vmem>>, vector<16x1024xf32>
    %c64_76 = arith.constant 64 : index
    %c0_77 = arith.constant 0 : index
    %62 = vector.load %arg14[%c64_76, %c0_77] : memref<176x1024xf32, #tpu.memory_space<vmem>>, vector<16x1024xf32>
    tpu.vector_store %arg14[%c64_76, %c0_77], %61 {strides = array<i32>} : memref<176x1024xf32, #tpu.memory_space<vmem>>, vector<16x1024xf32>,
    %c0_78 = arith.constant 0 : index
    %c640_79 = arith.constant 640 : index
    %63 = vector.load %arg13[%c0_78, %c640_79] : memref<16x2304xf32, #tpu.memory_space<vmem>>, vector<16x1024xf32>
    %c80_80 = arith.constant 80 : index
    %c0_81 = arith.constant 0 : index
    %64 = vector.load %arg14[%c80_80, %c0_81] : memref<176x1024xf32, #tpu.memory_space<vmem>>, vector<16x1024xf32>
    tpu.vector_store %arg14[%c80_80, %c0_81], %63 {strides = array<i32>} : memref<176x1024xf32, #tpu.memory_space<vmem>>, vector<16x1024xf32>,
    %c0_82 = arith.constant 0 : index
    %c768_83 = arith.constant 768 : index
    %65 = vector.load %arg13[%c0_82, %c768_83] : memref<16x2304xf32, #tpu.memory_space<vmem>>, vector<16x1024xf32>
    %c96_84 = arith.constant 96 : index
    %c0_85 = arith.constant 0 : index
    %66 = vector.load %arg14[%c96_84, %c0_85] : memref<176x1024xf32, #tpu.memory_space<vmem>>, vector<16x1024xf32>
    tpu.vector_store %arg14[%c96_84, %c0_85], %65 {strides = array<i32>} : memref<176x1024xf32, #tpu.memory_space<vmem>>, vector<16x1024xf32>,
    %c0_86 = arith.constant 0 : index
    %c896_87 = arith.constant 896 : index
    %67 = vector.load %arg13[%c0_86, %c896_87] : memref<16x2304xf32, #tpu.memory_space<vmem>>, vector<16x1024xf32>
    %c112_88 = arith.constant 112 : index
    %c0_89 = arith.constant 0 : index
    %68 = vector.load %arg14[%c112_88, %c0_89] : memref<176x1024xf32, #tpu.memory_space<vmem>>, vector<16x1024xf32>
    tpu.vector_store %arg14[%c112_88, %c0_89], %67 {strides = array<i32>} : memref<176x1024xf32, #tpu.memory_space<vmem>>, vector<16x1024xf32>,
    %c0_90 = arith.constant 0 : index
    %c1024_91 = arith.constant 1024 : index
    %69 = vector.load %arg13[%c0_90, %c1024_91] : memref<16x2304xf32, #tpu.memory_space<vmem>>, vector<16x1024xf32>
    %c128_92 = arith.constant 128 : index
    %c0_93 = arith.constant 0 : index
    %70 = vector.load %arg14[%c128_92, %c0_93] : memref<176x1024xf32, #tpu.memory_space<vmem>>, vector<16x1024xf32>
    tpu.vector_store %arg14[%c128_92, %c0_93], %69 {strides = array<i32>} : memref<176x1024xf32, #tpu.memory_space<vmem>>, vector<16x1024xf32>,
    %c0_94 = arith.constant 0 : index
    %c1152_95 = arith.constant 1152 : index
    %71 = vector.load %arg13[%c0_94, %c1152_95] : memref<16x2304xf32, #tpu.memory_space<vmem>>, vector<16x1024xf32>
    %c144_96 = arith.constant 144 : index
    %c0_97 = arith.constant 0 : index
    %72 = vector.load %arg14[%c144_96, %c0_97] : memref<176x1024xf32, #tpu.memory_space<vmem>>, vector<16x1024xf32>
    tpu.vector_store %arg14[%c144_96, %c0_97], %71 {strides = array<i32>} : memref<176x1024xf32, #tpu.memory_space<vmem>>, vector<16x1024xf32>,
    %c0_98 = arith.constant 0 : index
    %c1280_99 = arith.constant 1280 : index
    %73 = vector.load %arg13[%c0_98, %c1280_99] : memref<16x2304xf32, #tpu.memory_space<vmem>>, vector<16x1024xf32>
    %c160_100 = arith.constant 160 : index
    %c0_101 = arith.constant 0 : index
    %74 = vector.load %arg14[%c160_100, %c0_101] : memref<176x1024xf32, #tpu.memory_space<vmem>>, vector<16x1024xf32>
    tpu.vector_store %arg14[%c160_100, %c0_101], %73 {strides = array<i32>} : memref<176x1024xf32, #tpu.memory_space<vmem>>, vector<16x1024xf32>,
    %c0_102 = arith.constant 0 : index
    %c0_103 = arith.constant 0 : index
    %75 = vector.load %arg6[%c0_102, %c0_103] : memref<16x176xf32, #tpu.memory_space<vmem>>, vector<16x176xf32>
    %c0_104 = arith.constant 0 : index
    %c0_105 = arith.constant 0 : index
    %76 = vector.load %arg14[%c0_104, %c0_105] : memref<176x1024xf32, #tpu.memory_space<vmem>>, vector<176x1024xf32>
    %cst_106 = arith.constant dense<0.000000e+00> : vector<16x1024xf32>
    %77 = tpu.matmul %75, %76, %cst_106 {dimension_numbers = #tpu.dot_dimension_numbers<[1], [0], [0], [1], [0, 0, 1, 1], [], []>} : vector<16x176xf32>, vector<176x1024xf32>, vector<16x1024xf32> -> vector<16x1024xf32>
    %c0_107 = arith.constant 0 : index
    %c0_108 = arith.constant 0 : index
    %78 = vector.load %arg7[%c0_107, %c0_108] : memref<16x1xf32, #tpu.memory_space<vmem>>, vector<16x1xf32>
    %79 = vector.broadcast %78 : vector<16x1xf32> to vector<16x1024xf32>
    %80 = arith.addf %77, %79 : vector<16x1024xf32>
    %cst_109 = arith.constant 0.000000e+00 : f32
    %81 = vector.broadcast %cst_109 : f32 to vector<16x1024xf32>
    %82 = arith.maximumf %80, %81 : vector<16x1024xf32>
    %c0_110 = arith.constant 0 : index
    %c640_111 = arith.constant 640 : index
    %83 = vector.load %arg13[%c0_110, %c640_111] : memref<16x2304xf32, #tpu.memory_space<vmem>>, vector<16x1024xf32>
    tpu.vector_store %arg13[%c0_110, %c640_111], %82 {strides = array<i32>} : memref<16x2304xf32, #tpu.memory_space<vmem>>, vector<16x1024xf32>,
    %c0_112 = arith.constant 0 : index
    %c640_113 = arith.constant 640 : index
    %84 = vector.load %arg13[%c0_112, %c640_113] : memref<16x2304xf32, #tpu.memory_space<vmem>>, vector<16x768xf32>
    %c0_114 = arith.constant 0 : index
    %c0_115 = arith.constant 0 : index
    %85 = vector.load %arg14[%c0_114, %c0_115] : memref<176x1024xf32, #tpu.memory_space<vmem>>, vector<16x768xf32>
    tpu.vector_store %arg14[%c0_114, %c0_115], %84 {strides = array<i32>} : memref<176x1024xf32, #tpu.memory_space<vmem>>, vector<16x768xf32>,
    %c0_116 = arith.constant 0 : index
    %c768_117 = arith.constant 768 : index
    %86 = vector.load %arg13[%c0_116, %c768_117] : memref<16x2304xf32, #tpu.memory_space<vmem>>, vector<16x768xf32>
    %c16_118 = arith.constant 16 : index
    %c0_119 = arith.constant 0 : index
    %87 = vector.load %arg14[%c16_118, %c0_119] : memref<176x1024xf32, #tpu.memory_space<vmem>>, vector<16x768xf32>
    tpu.vector_store %arg14[%c16_118, %c0_119], %86 {strides = array<i32>} : memref<176x1024xf32, #tpu.memory_space<vmem>>, vector<16x768xf32>,
    %c0_120 = arith.constant 0 : index
    %c896_121 = arith.constant 896 : index
    %88 = vector.load %arg13[%c0_120, %c896_121] : memref<16x2304xf32, #tpu.memory_space<vmem>>, vector<16x768xf32>
    %c32_122 = arith.constant 32 : index
    %c0_123 = arith.constant 0 : index
    %89 = vector.load %arg14[%c32_122, %c0_123] : memref<176x1024xf32, #tpu.memory_space<vmem>>, vector<16x768xf32>
    tpu.vector_store %arg14[%c32_122, %c0_123], %88 {strides = array<i32>} : memref<176x1024xf32, #tpu.memory_space<vmem>>, vector<16x768xf32>,
    %c0_124 = arith.constant 0 : index
    %c0_125 = arith.constant 0 : index
    %90 = vector.load %arg8[%c0_124, %c0_125] : memref<64x48xf32, #tpu.memory_space<vmem>>, vector<64x48xf32>
    %c0_126 = arith.constant 0 : index
    %c0_127 = arith.constant 0 : index
    %91 = vector.load %arg14[%c0_126, %c0_127] : memref<176x1024xf32, #tpu.memory_space<vmem>>, vector<48x768xf32>
    %cst_128 = arith.constant dense<0.000000e+00> : vector<64x768xf32>
    %92 = tpu.matmul %90, %91, %cst_128 {dimension_numbers = #tpu.dot_dimension_numbers<[1], [0], [0], [1], [0, 0, 1, 1], [], []>} : vector<64x48xf32>, vector<48x768xf32>, vector<64x768xf32> -> vector<64x768xf32>
    %c0_129 = arith.constant 0 : index
    %c0_130 = arith.constant 0 : index
    %93 = vector.load %arg9[%c0_129, %c0_130] : memref<64x1xf32, #tpu.memory_space<vmem>>, vector<64x1xf32>
    %94 = vector.broadcast %93 : vector<64x1xf32> to vector<64x768xf32>
    %95 = arith.addf %92, %94 : vector<64x768xf32>
    %cst_131 = arith.constant 0.000000e+00 : f32
    %96 = vector.broadcast %cst_131 : f32 to vector<64x768xf32>
    %97 = arith.maximumf %95, %96 : vector<64x768xf32>
    %c0_132 = arith.constant 0 : index
    %c0_133 = arith.constant 0 : index
    %98 = vector.load %arg15[%c0_132, %c0_133] : memref<64x768xf32, #tpu.memory_space<vmem>>, vector<64x768xf32>
    tpu.vector_store %arg15[%c0_132, %c0_133], %97 {strides = array<i32>} : memref<64x768xf32, #tpu.memory_space<vmem>>, vector<64x768xf32>,
    %c0_134 = arith.constant 0 : index
    %c0_135 = arith.constant 0 : index
    %99 = vector.load %arg15[%c0_134, %c0_135] : memref<64x768xf32, #tpu.memory_space<vmem>>, vector<64x128xf32>
    %c0_136 = arith.constant 0 : index
    %c0_137 = arith.constant 0 : index
    %100 = vector.load %arg16[%c0_136, %c0_137] : memref<384x128xf32, #tpu.memory_space<vmem>>, vector<64x128xf32>
    tpu.vector_store %arg16[%c0_136, %c0_137], %99 {strides = array<i32>} : memref<384x128xf32, #tpu.memory_space<vmem>>, vector<64x128xf32>,
    %c0_138 = arith.constant 0 : index
    %c128_139 = arith.constant 128 : index
    %101 = vector.load %arg15[%c0_138, %c128_139] : memref<64x768xf32, #tpu.memory_space<vmem>>, vector<64x128xf32>
    %c64_140 = arith.constant 64 : index
    %c0_141 = arith.constant 0 : index
    %102 = vector.load %arg16[%c64_140, %c0_141] : memref<384x128xf32, #tpu.memory_space<vmem>>, vector<64x128xf32>
    tpu.vector_store %arg16[%c64_140, %c0_141], %101 {strides = array<i32>} : memref<384x128xf32, #tpu.memory_space<vmem>>, vector<64x128xf32>,
    %c0_142 = arith.constant 0 : index
    %c256_143 = arith.constant 256 : index
    %103 = vector.load %arg15[%c0_142, %c256_143] : memref<64x768xf32, #tpu.memory_space<vmem>>, vector<64x128xf32>
    %c128_144 = arith.constant 128 : index
    %c0_145 = arith.constant 0 : index
    %104 = vector.load %arg16[%c128_144, %c0_145] : memref<384x128xf32, #tpu.memory_space<vmem>>, vector<64x128xf32>
    tpu.vector_store %arg16[%c128_144, %c0_145], %103 {strides = array<i32>} : memref<384x128xf32, #tpu.memory_space<vmem>>, vector<64x128xf32>,
    %c0_146 = arith.constant 0 : index
    %c384_147 = arith.constant 384 : index
    %105 = vector.load %arg15[%c0_146, %c384_147] : memref<64x768xf32, #tpu.memory_space<vmem>>, vector<64x128xf32>
    %c192 = arith.constant 192 : index
    %c0_148 = arith.constant 0 : index
    %106 = vector.load %arg16[%c192, %c0_148] : memref<384x128xf32, #tpu.memory_space<vmem>>, vector<64x128xf32>
    tpu.vector_store %arg16[%c192, %c0_148], %105 {strides = array<i32>} : memref<384x128xf32, #tpu.memory_space<vmem>>, vector<64x128xf32>,
    %c0_149 = arith.constant 0 : index
    %c512_150 = arith.constant 512 : index
    %107 = vector.load %arg15[%c0_149, %c512_150] : memref<64x768xf32, #tpu.memory_space<vmem>>, vector<64x128xf32>
    %c256_151 = arith.constant 256 : index
    %c0_152 = arith.constant 0 : index
    %108 = vector.load %arg16[%c256_151, %c0_152] : memref<384x128xf32, #tpu.memory_space<vmem>>, vector<64x128xf32>
    tpu.vector_store %arg16[%c256_151, %c0_152], %107 {strides = array<i32>} : memref<384x128xf32, #tpu.memory_space<vmem>>, vector<64x128xf32>,
    %c0_153 = arith.constant 0 : index
    %c640_154 = arith.constant 640 : index
    %109 = vector.load %arg15[%c0_153, %c640_154] : memref<64x768xf32, #tpu.memory_space<vmem>>, vector<64x128xf32>
    %c320 = arith.constant 320 : index
    %c0_155 = arith.constant 0 : index
    %110 = vector.load %arg16[%c320, %c0_155] : memref<384x128xf32, #tpu.memory_space<vmem>>, vector<64x128xf32>
    tpu.vector_store %arg16[%c320, %c0_155], %109 {strides = array<i32>} : memref<384x128xf32, #tpu.memory_space<vmem>>, vector<64x128xf32>,
    %c0_156 = arith.constant 0 : index
    %c0_157 = arith.constant 0 : index
    %111 = vector.load %arg10[%c0_156, %c0_157] : memref<16x384xf32, #tpu.memory_space<vmem>>, vector<16x384xf32>
    %c0_158 = arith.constant 0 : index
    %c0_159 = arith.constant 0 : index
    %112 = vector.load %arg16[%c0_158, %c0_159] : memref<384x128xf32, #tpu.memory_space<vmem>>, vector<384x128xf32>
    %cst_160 = arith.constant dense<0.000000e+00> : vector<16x128xf32>
    %113 = tpu.matmul %111, %112, %cst_160 {dimension_numbers = #tpu.dot_dimension_numbers<[1], [0], [0], [1], [0, 0, 1, 1], [], []>} : vector<16x384xf32>, vector<384x128xf32>, vector<16x128xf32> -> vector<16x128xf32>
    %c0_161 = arith.constant 0 : index
    %c0_162 = arith.constant 0 : index
    %114 = vector.load %arg11[%c0_161, %c0_162] : memref<16x1xf32, #tpu.memory_space<vmem>>, vector<16x1xf32>
    %115 = vector.broadcast %114 : vector<16x1xf32> to vector<16x128xf32>
    %116 = arith.addf %113, %115 : vector<16x128xf32>
    %117 = vector.shape_cast %116 : vector<16x128xf32> to vector<1x16x128xf32>
    %c0_163 = arith.constant 0 : index
    %c0_164 = arith.constant 0 : index
    %c0_165 = arith.constant 0 : index
    %118 = vector.load %arg12[%c0_163, %c0_164, %c0_165] : memref<1x16x128xf32, #tpu.memory_space<vmem>>, vector<1x16x128xf32>
    tpu.vector_store %arg12[%c0_163, %c0_164, %c0_165], %117 {strides = array<i32>} : memref<1x16x128xf32, #tpu.memory_space<vmem>>, vector<1x16x128xf32>,
    return
  }
  func.func @transform_0(%arg0: i32) -> (i32, i32, i32) {
    %c0_i32 = arith.constant 0 : i32
    %c0_i32_0 = arith.constant 0 : i32
    %c0_i32_1 = arith.constant 0 : i32
    return %arg0, %c0_i32, %c0_i32_0 : i32, i32, i32
  }
  func.func @transform_1(%arg0: i32) -> (i32, i32) {
    %c0_i32 = arith.constant 0 : i32
    %c0_i32_0 = arith.constant 0 : i32
    %c0_i32_1 = arith.constant 0 : i32
    return %c0_i32, %c0_i32_0 : i32, i32
  }
  func.func @transform_2(%arg0: i32) -> (i32, i32) {
    %c0_i32 = arith.constant 0 : i32
    %c0_i32_0 = arith.constant 0 : i32
    %c0_i32_1 = arith.constant 0 : i32
    return %c0_i32, %c0_i32_0 : i32, i32
  }
  func.func @transform_3(%arg0: i32) -> (i32, i32) {
    %c0_i32 = arith.constant 0 : i32
    %c0_i32_0 = arith.constant 0 : i32
    %c0_i32_1 = arith.constant 0 : i32
    return %c0_i32, %c0_i32_0 : i32, i32
  }
  func.func @transform_4(%arg0: i32) -> (i32, i32) {
    %c0_i32 = arith.constant 0 : i32
    %c0_i32_0 = arith.constant 0 : i32
    %c0_i32_1 = arith.constant 0 : i32
    return %c0_i32, %c0_i32_0 : i32, i32
  }
  func.func @transform_5(%arg0: i32) -> (i32, i32) {
    %c0_i32 = arith.constant 0 : i32
    %c0_i32_0 = arith.constant 0 : i32
    %c0_i32_1 = arith.constant 0 : i32
    return %c0_i32, %c0_i32_0 : i32, i32
  }
  func.func @transform_6(%arg0: i32) -> (i32, i32) {
    %c0_i32 = arith.constant 0 : i32
    %c0_i32_0 = arith.constant 0 : i32
    %c0_i32_1 = arith.constant 0 : i32
    return %c0_i32, %c0_i32_0 : i32, i32
  }
  func.func @transform_7(%arg0: i32) -> (i32, i32) {
    %c0_i32 = arith.constant 0 : i32
    %c0_i32_0 = arith.constant 0 : i32
    %c0_i32_1 = arith.constant 0 : i32
    return %c0_i32, %c0_i32_0 : i32, i32
  }
  func.func @transform_8(%arg0: i32) -> (i32, i32) {
    %c0_i32 = arith.constant 0 : i32
    %c0_i32_0 = arith.constant 0 : i32
    %c0_i32_1 = arith.constant 0 : i32
    return %c0_i32, %c0_i32_0 : i32, i32
  }
  func.func @transform_9(%arg0: i32) -> (i32, i32) {
    %c0_i32 = arith.constant 0 : i32
    %c0_i32_0 = arith.constant 0 : i32
    %c0_i32_1 = arith.constant 0 : i32
    return %c0_i32, %c0_i32_0 : i32, i32
  }
  func.func @transform_10(%arg0: i32) -> (i32, i32) {
    %c0_i32 = arith.constant 0 : i32
    %c0_i32_0 = arith.constant 0 : i32
    %c0_i32_1 = arith.constant 0 : i32
    return %c0_i32, %c0_i32_0 : i32, i32
  }
  func.func @transform_11(%arg0: i32) -> (i32, i32, i32) {
    %c0_i32 = arith.constant 0 : i32
    %c0_i32_0 = arith.constant 0 : i32
    %c0_i32_1 = arith.constant 0 : i32
    return %arg0, %c0_i32, %c0_i32_0 : i32, i32, i32
  }
}

</mosaic_0001>

<bundles_post_ra>
// kernel: tpu_custom_call.1
= control target key start
LH: loop header
LB: loop body
LE: loop exit
PB: predicated region body
PF: predicated region fallthrough
CT: control target
= control target key end

     0   :  { %16 = vsyncpa [#allocation7], 0  ;;  %s5490_s0 = inlined_call_operand.hbm [shape: f32[2,32,1408], index: 0, kind: input, shape index: {}]   ;;  %s5491_s1 = inlined_call_operand.vmem [shape: f32[16,128], index: 1, kind: input, shape index: {}]   ;;  %s5492_s2 = inlined_call_operand.vmem [shape: f32[16,1], index: 2, kind: input, shape index: {}]   ;;  %s5493_s3 = inlined_call_operand.vmem [shape: f32[16,176], index: 3, kind: input, shape index: {}]   ;;  %s5494_s4 = inlined_call_operand.vmem [shape: f32[16,1], index: 4, kind: input, shape index: {}]   ;;  %s5495_s5 = inlined_call_operand.vmem [shape: f32[16,176], index: 5, kind: input, shape index: {}]   ;;  %s5496_s6 = inlined_call_operand.vmem [shape: f32[16,1], index: 6, kind: input, shape index: {}]   ;;  %s5497_s7 = inlined_call_operand.vmem [shape: f32[64,48], index: 7, kind: input, shape index: {}]   ;;  %s5498_s8 = inlined_call_operand.vmem [shape: f32[64,1], index: 8, kind: input, shape index: {}]   ;;  %s5499_s9 = inlined_call_operand.vmem [shape: f32[16,384], index: 9, kind: input, shape index: {}]   ;;  %s5500_s10 = inlined_call_operand.vmem [shape: f32[16,1], index: 10, kind: input, shape index: {}]   ;;  %s5501_s11 = inlined_call_operand.hbm [shape: f32[2,16,128], index: 11, kind: output, shape index: {}]  }
   0x1   :  { %18 = vsyncpa [#allocation7 + $0x1], 0 }
   0x2   :  { %19 = vsyncpa [#allocation8], 0 }
   0x3   :  { %21 = vsyncpa [#allocation8 + $0x1], 0  ;;  %s4754_s17 = smov 0   ;;  %s4756_s18 = smov 0  }
   0x4   :  { %s4758_s19 = smov 0   ;;  %s4760_s20 = smov 0  }
   0x5 LB: > { %5507 = sst [smem:[#allocation12_spill]] %s4679_s19  ;;  %s4775_s21 = sadd.s32 4294967295, %s4683_s20   ;;  %s4683_s20 = sphi %s4760_s20, %s5519_s20   ;;  %s4679_s19 = sphi %s4758_s19, %s5521_s19   ;;  %s4675_s18 = sphi %s4756_s18, %s5523_s18   ;;  %s4671_s17 = sphi %s4754_s17, %s5522_s17  }
   0x6   : > { %s3884_s22 = sadd.s32 4294967294, %s4683_s20   ;;  %s4779_s23 = sadd.s32 1, %s4683_s20  }
   0x7   : > { %5508 = sst [smem:[#allocation13_spill]] %s4779_s23  ;;  %s34_s24 = sadd.s32 1, %s4679_s19 }
   0x8   : > { %s31_s25 = ssub.s32 %s4683_s20, %s4779_s23  ;;  %p41_p0 = scmp.ne.s32.totalorder %s4679_s19, %s4675_s18 }
   0x9   : > { %p32_p1 = scmp.eq.s32.totalorder %s31_s25, 0  ;;  %p42_p2 = scmp.eq.s32.totalorder %s4683_s20, 0 }
   0xa   : > { %p47_p3 = scmp.ne.s32.totalorder %s4675_s18, %s4671_s17  ;;  %p48_p4 = scmp.eq.s32.totalorder %s4775_s21, 0 }
   0xb   : > { %s4791_s26 = scalar_select %p32_p1, %s4679_s19, %s34_s24  }
   0xc   : > { %p43_p5 = por %p42_p2, %p41_p0  ;;  %p4793_p6 = por %p48_p4, %p47_p3 }
   0xd   : > { %5509 = sst [smem:[#allocation14_spill]] %s4791_s26  ;;  %p281_p7 = scmp.eq.s32.totalorder %s4775_s21, 1 }
   0xe   : > { %p287_p8 = scmp.eq.s32.totalorder %s3884_s22, 1  ;;  %p4544_p10 = scmp.lt.s32.totalorder %s4683_s20, 2 }
   0xf   : > { %p4800_p11 = por %p281_p7, %p41_p0  ;;  %s337_s30 = sand.u32 1, %s4679_s19  }
  0x10   : > { %p4804_p12 = por %p287_p8, %p47_p3  ;;  %s4530_s12 = smul.u32 5632, %s4683_s20 }
  0x11   : > { %s5511_s28 = scalar_select %p4800_p11, 1, 0 }
  0x12   : > { %s5512_s29 = scalar_select %p4804_p12, 1, 0 }
  0x13   : > { %s4529_s13 = smul.u32 352, %s337_s30  ;;  %s4813_s16 = scalar_lea.hbm %s5490_s0, %s4530_s12 }
  0x14   : > { %5513 = sst [smem:[#allocation15_spill]] %s5512_s29  ;;  %p4815_p13 = pnand %p4544_p10, %p43_p5 }
  0x15   : > { %s341_s24 = scalar_lea.vmem [#allocation6], %s4529_s13  ;;  %s4821_s26 = scalar_lea.sflag [#allocation7], %s337_s30 }
  0x16   : > { %s348_s25 = sshll.u32 %s341_s24, 4  ;;  %s4587_s19 = scalar_lea.hbm %s4813_s16, 5632  ;;  %s4819_s25 = int_to_ptr.vmem [resolvable:$true] %s348_s25 }
  0x17   : > { %p4588_p0 = scmp.ne.s32.totalorder %s4813_s16, %s4587_s19  ;;  %p4589_p1 = pneg %p4815_p13 }
  0x18   : > { %s4592_s15 = scalar_lea.hbm %s5490_s0, 11264  ;;  %p4593_p4 = scmp.lt.u32.totalorder %s4813_s16, %s5490_s0 }
  0x19   : > { %p4590_p2 = pnand %p4589_p1, %p4588_p0  ;;  %p4594_p5 = scmp.lt.u32.totalorder %s4592_s15, %s4587_s19 }
  0x1a   : > { %p4596_p8 = scmp.lt.u32.totalorder %s4587_s19, %s4813_s16 }
  0x1b   : > { %p4591_p3 = pneg %p4590_p2  ;;  %p4595_p7 = por %p4594_p5, %p4593_p4 }
  0x1d   : > { %p4597_p10 = por %p4596_p8, %p4595_p7 }
  0x1f   : > { %p4598_p9 = pnand %p4597_p10, %p4591_p3 }
  0x21   : > { %4601 = shalt.err (!%p4598_p9)
}
  0x22   : > { %s4602_s30 = scalar_lea.vmem %s4819_s25, 5632  ;;  %s4685_s13 = smov [#allocation6]  }
  0x23   : > { %p4603_p0 = scmp.ne.s32.totalorder %s4819_s25, %s4602_s30  ;;  %s4607_s24 = sshll.u32 %s4685_s13, 4  ;;  %s4608_s24 = int_to_ptr.vmem [resolvable:$false] %s4607_s24 }
  0x24   : > { %s4609_s23 = scalar_lea.vmem %s4608_s24, 11264  ;;  %p4610_p11 = scmp.lt.s32.totalorder %s4819_s25, %s4608_s24 }
  0x25   : > { %p4605_p2 = pnand %p4603_p0, %p4589_p1  ;;  %p4611_p4 = scmp.lt.s32.totalorder %s4609_s23, %s4602_s30 }
  0x27   : > { %p4606_p12 = pneg %p4605_p2  ;;  %p4612_p5 = por %p4611_p4, %p4610_p11 }
  0x29   : > { %p4613_p7 = pnand %p4612_p5, %p4606_p12 }
  0x2b   : > { %4616 = shalt.err (!%p4613_p7)
}
  0x2c   : > { %s4686_s19 = smov 1408   ;;  %s4687_s29 = smov 88  }
  0x2d   : > { %4539 = dma.hbm_to_vmem [thread:$0]  (!%p4815_p13), %s4813_s16, 5632, %s4819_s25, %s4821_s26, %s4686_s19, %s4686_s19, %s4687_s29  }
  0x2e   : > { %p3888_p9 = scmp.ge.s32.totalorder %s4683_s20, 1  ;;  %p356_p1 = scmp.lt.s32.totalorder %s4683_s20, 3 }
  0x30   : > { %p357_p3 = pnand %p3888_p9, %p356_p1 }
  0x31   : > { %s4852_s12 = sand.u32 (!%p357_p3), 1, %s4675_s18  }
  0x32   : > { %360 = sbr.rel (%p357_p3) target bundleno = 1400 (0x578), region = 64  ;;  %s363_s15 = scalar_lea.sflag (!%p357_p3), [#allocation7], %s4852_s12 }
  0x33   : > { %s4531_s14 = smul.u32 (!%p357_p3), 352, %s4852_s12 }
  0x35   : > { %s4856_s30 = scalar_lea.vmem (!%p357_p3), [#allocation6], %s4531_s14 }
  0x39   : > { %4662 = dma.done.wait (%p4793_p6), %s363_s15, 5632  }
  0x3a   : > { %4664 = vsyncadd (%p4793_p6), %s363_s15, 4294961664  ;;  %v4688_v0 = vmov 0.0   ;;  %v4689_v1 = vmov 0   ;;  %v426_v2 = vld [vmem:[%s4856_s30 + $0x8] sm:$0xff]  ;;  %v437_v3 = vld [vmem:[%s4856_s30 + $0x60] sm:$0xff]  ;;  %vm1623_vm0 = vcmask 392192  }
  0x3b   : > { %803 = vmatprep.mubr.f32.mxu0 %v4688_v0  ;;  %880 = vmatprep.mubr.f32.mxu1 %v4688_v0  ;;  %v428_v4 = vld [vmem:[%s4856_s30 + $0x18] sm:$0xff]  ;;  %v4027_v5 = vpack.c.bf16 %v437_v3, %v426_v2  ;;  %v439_v6 = vld [vmem:[%s4856_s30 + $0x70] sm:$0xff]  ;;  %v425_v7 = vld [vmem:[%s4856_s30] sm:$0xff]  ;;  %s3889_s22 = sshll.u32 %s4852_s12, 4  ;;  %s3935_s24 = sshll.u32 %s4775_s21, 8 }
  0x3c   : > { %4585 = vset.pattern.permute.xlu0 %v4689_v1  ;;  %4586 = vset.pattern.permute.xlu1 %v4689_v1  ;;  %v436_v8 = vld [vmem:[%s4856_s30 + $0x58] sm:$0xff]  ;;  %v4870_v9 = vpack.c.bf16 %v439_v6, %v428_v4  ;;  %v427_v11 = vld [vmem:[%s4856_s30 + $0x10] sm:$0xff]  ;;  %v438_v12 = vld [vmem:[%s4856_s30 + $0x68] sm:$0xff]  ;;  %s404_s25 = scalar_lea.vmem [#allocation9], %s3889_s22  ;;  %s5446_s19 = scalar_lea.hbm %s5501_s11, %s3935_s24 }
  0x3d   : > { %v4029_v10 = vpack.c.bf16 %v436_v8, %v425_v7  ;;  %v448_v13 = vld [vmem:[%s4856_s30 + $0xb8] sm:$0xff]  ;;  %4028 = vmatprep.subr.bf16.mxu0 %v4027_v5  ;;  %v4035_v14 = vpack.c.bf16 %v438_v12, %v427_v11  ;;  %v459_v15 = vld [vmem:[%s4856_s30 + $0x110] sm:$0xff]  ;;  %v450_v16 = vld [vmem:[%s4856_s30 + $0xc8] sm:$0xff]  ;;  %s3811_s13 = sshll.u32 %s404_s25, 4  ;;  %s3798_s29 = scalar_lea.sflag [#allocation8], %s4852_s12  ;;  %s5441_s13 = int_to_ptr.vmem [resolvable:$true] %s3811_s13 }
  0x3e   : > { %v461_v17 = vld [vmem:[%s4856_s30 + $0x120] sm:$0xff]  ;;  %4060 = vmatprep.subr.bf16.mxu1 %v4870_v9  ;;  %v4031_v18 = vpack.c.bf16 %v459_v15, %v448_v13  ;;  %v447_v20 = vld [vmem:[%s4856_s30 + $0xb0] sm:$0xff]  ;;  %v458_v21 = vld [vmem:[%s4856_s30 + $0x108] sm:$0xff]  ;;  %v4690_v15 = vmov 0.0|0.0   ;;  %s4617_s14 = scalar_lea.vmem %s5441_s13, 256  ;;  %p5515_p11 = scmp.ne.s32.totalorder %s5511_s28, 0 }
  0x3f   : > { %4030 = vmatpush1.bf16.msra.mxu0 %v4029_v10  ;;  %v4879_v19 = vpack.c.bf16 %v461_v17, %v450_v16  ;;  %v449_v22 = vld [vmem:[%s4856_s30 + $0xc0] sm:$0xff]  ;;  %4062 = vmatpush1.bf16.msra.mxu1 %v4035_v14  ;;  %v4033_v23 = vpack.c.bf16 %v458_v21, %v447_v20  ;;  %v460_v24 = vld [vmem:[%s4856_s30 + $0x118] sm:$0xff]  ;;  %v451_v29 = vld [vmem:[%s4856_s30 + $0xd0] sm:$0xff]  ;;  %p4618_p6 = scmp.ne.s32.totalorder %s5441_s13, %s4617_s14  ;;  %s4691_s21 = smov [#allocation9]  }
  0x40   : > { %v429_v25 = vld [vmem:[%s4856_s30 + $0x20] sm:$0xff]  ;;  %v440_v26 = vld [vmem:[%s4856_s30 + $0x78] sm:$0xff]  ;;  %4032 = vmatprep.subr.bf16.mxu0 %v4031_v18  ;;  %v4039_v27 = vpack.c.bf16 %v460_v24, %v449_v22  ;;  %v462_v30 = vld [vmem:[%s4856_s30 + $0x128] sm:$0xff]  ;;  %s4621_s15 = sshll.u32 %s4691_s21, 4  ;;  %s4622_s15 = int_to_ptr.vmem [resolvable:$false] %s4621_s15 }
  0x41   : > { %4064 = vmatprep.subr.bf16.mxu1 %v4879_v19  ;;  %v4888_v28 = vpack.c.bf16 %v440_v26, %v429_v25  ;;  %v4893_v31 = vpack.c.bf16 %v462_v30, %v451_v29  ;;  %v430_v32 = vld [vmem:[%s4856_s30 + $0x28] sm:$0xff]  ;;  %v441_v33 = vld [vmem:[%s4856_s30 + $0x80] sm:$0xff]  ;;  %v452_v35 = vld [vmem:[%s4856_s30 + $0xd8] sm:$0xff]  ;;  %p4619_p12 = pnand %p4618_p6, %p5515_p11  ;;  %s4623_s26 = scalar_lea.vmem %s4622_s15, 512 }
  0x42   : > { %v4899_v34 = vpack.c.bf16 %v441_v33, %v430_v32  ;;  %v463_v36 = vld [vmem:[%s4856_s30 + $0x130] sm:$0xff]  ;;  %v727_v37 = vld [vmem:[%s5492_s2] sm:$0xff]  ;;  %v728_v38 = vld [vmem:[%s5492_s2 + $0x8] sm:$0xff]  ;;  %p4624_p8 = scmp.lt.s32.totalorder %s5441_s13, %s4622_s15  ;;  %p4625_p10 = scmp.lt.s32.totalorder %s4623_s26, %s4617_s14 }
  0x43   : > { %4034 = vmatpush1.bf16.msra.mxu0 %v4033_v23  ;;  %4066 = vmatpush1.bf16.msra.mxu1 %v4039_v27  ;;  %v4912_v39 = vpack.c.bf16 %v463_v36, %v452_v35  ;;  %v431_v40 = vld [vmem:[%s4856_s30 + $0x30] sm:$0xff]  ;;  %v442_v41 = vld [vmem:[%s4856_s30 + $0x88] sm:$0xff]  ;;  %v2502_v42 = vld [vmem:[%s5496_s6] sm:$0xff]  ;;  %p4620_p13 = pneg %p4619_p12 }
  0x44   : > { %4036 = vmatprep.subr.bf16.mxu0 %v4035_v14  ;;  %4068 = vmatprep.subr.bf16.mxu1 %v4888_v28  ;;  %v4922_v43 = vpack.c.bf16 %v442_v41, %v431_v40  ;;  %v453_v44 = vld [vmem:[%s4856_s30 + $0xe0] sm:$0xff]  ;;  %v464_v45 = vld [vmem:[%s4856_s30 + $0x138] sm:$0xff]  ;;  %v443_v49 = vld [vmem:[%s4856_s30 + $0x90] sm:$0xff]  ;;  %p4626_p0 = por %p4625_p10, %p4624_p8 }
  0x45   : > { %731 = vperm.xlu0 %4585, %v727_v37   ;;  %v2976_v46 = vld [vmem:[%s5498_s8] sm:$0xff]  ;;  %v4932_v47 = vpack.c.bf16 %v464_v45, %v453_v44  ;;  %v432_v48 = vld [vmem:[%s4856_s30 + $0x38] sm:$0xff]  ;;  %v2978_v50 = vld [vmem:[%s5498_s8 + $0x10] sm:$0xff] }
  0x46   : > { %v4943_v51 = vpack.c.bf16 %v443_v49, %v432_v48  ;;  %v454_v52 = vld [vmem:[%s4856_s30 + $0xe8] sm:$0xff]  ;;  %v465_v53 = vld [vmem:[%s4856_s30 + $0x140] sm:$0xff]  ;;  %v444_v57 = vld [vmem:[%s4856_s30 + $0x98] sm:$0xff]  ;;  %p4627_p2 = pnand %p4626_p0, %p4620_p13 }
  0x47   : > { %4038 = vmatpush1.bf16.msra.mxu0 %v4027_v5  ;;  %4070 = vmatpush1.bf16.msra.mxu1 %v4870_v9  ;;  %v4951_v54 = vld [vmem:[%s5491_s1] sm:$0xff]  ;;  %v4111_v55 = vpack.c.bf16 %v465_v53, %v454_v52  ;;  %v4964_v58 = vld [vmem:[%s5491_s1 + $0x8] sm:$0xff]  ;;  %v455_v60 = vld [vmem:[%s4856_s30 + $0xf0] sm:$0xff] }
  0x48   : > { %4040 = vmatprep.subr.bf16.mxu0 %v4039_v27  ;;  %4072 = vmatprep.subr.bf16.mxu1 %v4893_v31  ;;  %v433_v56 = vld [vmem:[%s4856_s30 + $0x40] sm:$0xff]  ;;  %v466_v61 = vld [vmem:[%s4856_s30 + $0x148] sm:$0xff]  ;;  %v2982_v3 = vld [vmem:[%s5498_s8 + $0x30] sm:$0xff] }
  0x49   : > { %736 = vperm.xlu0 %4585, %v728_v38   ;;  %v4115_v59 = vpack.c.bf16 %v444_v57, %v433_v56  ;;  %v2980_v62 = vld [vmem:[%s5498_s8 + $0x20] sm:$0xff]  ;;  %v4119_v63 = vpack.c.bf16 %v466_v61, %v455_v60  ;;  %v434_v1 = vld [vmem:[%s4856_s30 + $0x48] sm:$0xff]  ;;  %v456_v5 = vld [vmem:[%s4856_s30 + $0xf8] sm:$0xff] }
  0x4a   : > { %v445_v2 = vld [vmem:[%s4856_s30 + $0xa0] sm:$0xff]  ;;  %v467_v6 = vld [vmem:[%s4856_s30 + $0x150] sm:$0xff]  ;;  %v446_v10 = vld [vmem:[%s4856_s30 + $0xa8] sm:$0xff] }
  0x4b   : > { %4042 = vmatpush1.bf16.msra.mxu0 %v4031_v18  ;;  %4074 = vmatpush1.bf16.msra.mxu1 %v4879_v19  ;;  %v4139_v4 = vpack.c.bf16 %v445_v2, %v434_v1  ;;  %v3633_v7 = vld [vmem:[%s5500_s10] sm:$0xff]  ;;  %v4143_v8 = vpack.c.bf16 %v467_v6, %v456_v5  ;;  %v468_v13 = vld [vmem:[%s4856_s30 + $0x158] sm:$0xff]  ;;  %v5025_v16 = vld [vmem:[%s5493_s3 + $0x8] sm:$0xff] }
  0x4c   : > { %4044 = vmatprep.subr.bf16.mxu0 %v4870_v9  ;;  %4076 = vmatprep.subr.bf16.mxu1 %v4899_v34  ;;  %v457_v12 = vld [vmem:[%s4856_s30 + $0x100] sm:$0xff]  ;;  %v1612_v18 = vld [vmem:[%s5494_s4 + $0x8] sm:$0xff]  ;;  %v2979_v21 = vld [vmem:[%s5498_s8 + $0x18] sm:$0xff] }
  0x4d   : > { %2506 = vperm.xlu0 %4585, %v2502_v42   ;;  %v1611_v17 = vld [vmem:[%s5494_s4] sm:$0xff]  ;;  %v2977_v20 = vld [vmem:[%s5498_s8 + $0x8] sm:$0xff]  ;;  %v2983_v23 = vld [vmem:[%s5498_s8 + $0x38] sm:$0xff] }
  0x4e   : > { %1615 = vperm.xlu1 %4586, %v1611_v17   ;;  %v2981_v22 = vld [vmem:[%s5498_s8 + $0x28] sm:$0xff] }
  0x4f   : > { %4046 = vmatpush1.bf16.msra.mxu0 %v4035_v14  ;;  %4078 = vmatpush1.bf16.msra.mxu1 %v4888_v28  ;;  %v4151_v14 = vpack.c.bf16 %v468_v13, %v457_v12  ;;  %v3634_v24 = vld [vmem:[%s5500_s10 + $0x8] sm:$0xff] }
  0x50   : > { %4048 = vmatprep.subr.bf16.mxu0 %v4879_v19  ;;  %4080 = vmatprep.subr.bf16.mxu1 %v4912_v39 }
  0x51   : > { %2986 = vperm.xlu0 %4585, %v2976_v46  }
  0x52   : > { %1620 = vperm.xlu1 %4586, %v1612_v18  }
  0x53   : > { %4050 = vmatpush1.bf16.msra.mxu0 %v4039_v27  ;;  %4082 = vmatpush1.bf16.msra.mxu1 %v4893_v31 }
  0x54   : > { %4052 = vmatprep.subr.bf16.mxu0 %v4888_v28  ;;  %4084 = vmatprep.subr.bf16.mxu1 %v4922_v43 }
  0x55   : > { %2996 = vperm.xlu0 %4585, %v2978_v50  }
  0x57   : > { %4054 = vmatpush1.bf16.msra.mxu0 %v4870_v9  ;;  %4086 = vmatpush1.bf16.msra.mxu1 %v4899_v34  ;;  %v435_v9 = vld [vmem:[%s4856_s30 + $0x50] sm:$0xff] }
  0x58   : > { %4056 = vmatprep.subr.bf16.mxu0 %v4893_v31  ;;  %4088 = vmatprep.subr.bf16.mxu1 %v4932_v47  ;;  %v4147_v11 = vpack.c.bf16 %v446_v10, %v435_v9 }
  0x59   : > { %3006 = vperm.xlu0 %4585, %v2980_v62  }
  0x5b   : > { %4058 = vmatpush1.bf16.msra.mxu0 %v4879_v19  ;;  %4090 = vmatpush1.bf16.msra.mxu1 %v4912_v39  ;;  %v2503_v19 = vld [vmem:[%s5496_s6 + $0x8] sm:$0xff] }
  0x5c   : > { %4092 = vmatprep.subr.bf16.mxu0 %v4899_v34  ;;  %4124 = vmatprep.subr.bf16.mxu1 %v4943_v51 }
  0x5d   : > { %3016 = vperm.xlu0 %4585, %v2982_v3   ;;  %2511 = vperm.xlu1 %4586, %v2503_v19  }
  0x5e   : > { %804 = vmatmul.mubr.f32.vlgmr.msra.gmra.mrb[0].mxu0 %v4951_v54  ;;  %881 = vmatmul.mubr.f32.vlgmr.msra.gmra.mrb[0].mxu1 %v4951_v54 }
  0x5f   : > { %4094 = vmatpush1.bf16.msra.mxu0 %v4888_v28  ;;  %4126 = vmatpush1.bf16.msra.mxu1 %v4922_v43 }
  0x60   : > { %809 = vmatprep.mubr.f32.mxu0 %v4688_v0  ;;  %4096 = vmatprep.subr.bf16.mxu0 %v4912_v39 }
  0x61   : > { %4128 = vmatprep.subr.bf16.mxu1 %v4111_v55  ;;  %886 = vmatprep.mubr.f32.mxu1 %v4688_v0 }
  0x62   : > { %810 = vmatmul.mubr.f32.gmra.mrb[2].mxu0 %v4964_v58  ;;  %887 = vmatmul.mubr.f32.gmra.mrb[2].mxu1 %v4964_v58 }
  0x63   : > { %4098 = vmatpush1.bf16.msra.mxu0 %v4893_v31  ;;  %4130 = vmatpush1.bf16.msra.mxu1 %v4932_v47 }
  0x64   : > { %4100 = vmatprep.subr.bf16.mxu0 %v4922_v43  ;;  %4132 = vmatprep.subr.bf16.mxu1 %v4115_v59 }
  0x65   : > { %957 = vmatprep.mubr.f32.mxu0 %v4688_v0  ;;  %1034 = vmatprep.mubr.f32.mxu1 %v4688_v0 }
  0x66   : > { %3637 = vperm.xlu0 %4585, %v3633_v7   ;;  %2991 = vperm.xlu1 %4586, %v2977_v20  }
  0x67   : > { %4102 = vmatpush1.bf16.msra.mxu0 %v4899_v34  ;;  %4134 = vmatpush1.bf16.msra.mxu1 %v4943_v51 }
  0x68   : > { %4104 = vmatprep.subr.bf16.mxu0 %v4932_v47  ;;  %4136 = vmatprep.subr.bf16.mxu1 %v4119_v63 }
  0x6a   : > { %3001 = vperm.xlu1 %4586, %v2979_v21  }
  0x6b   : > { %4106 = vmatpush1.bf16.msra.mxu0 %v4912_v39  ;;  %4138 = vmatpush1.bf16.msra.mxu1 %v4111_v55 }
  0x6c   : > { %4108 = vmatprep.subr.bf16.mxu0 %v4943_v51  ;;  %4140 = vmatprep.subr.bf16.mxu1 %v4139_v4 }
  0x6e   : > { %3011 = vperm.xlu1 %4586, %v2981_v22   ;;  %v1431_v22 = vld [vmem:[%s5493_s3] sm:$0xff] }
  0x6f   : > { %4110 = vmatpush1.bf16.msra.mxu0 %v4922_v43  ;;  %4142 = vmatpush1.bf16.msra.mxu1 %v4115_v59 }
  0x70   : > { %4112 = vmatprep.subr.bf16.mxu0 %v4111_v55  ;;  %4144 = vmatprep.subr.bf16.mxu1 %v4143_v8 }
  0x72   : > { %3021 = vperm.xlu1 %4586, %v2983_v23   ;;  %v1434_v23 = vld [vmem:[%s5493_s3 + $0x18] sm:$0xff] }
  0x73   : > { %4114 = vmatpush1.bf16.msra.mxu0 %v4932_v47  ;;  %4146 = vmatpush1.bf16.msra.mxu1 %v4119_v63 }
  0x74   : > { %4116 = vmatprep.subr.bf16.mxu0 %v4115_v59  ;;  %4148 = vmatprep.subr.bf16.mxu1 %v4147_v11 }
  0x76   : > { %3642 = vperm.xlu1 %4586, %v3634_v24   ;;  %v1433_v24 = vld [vmem:[%s5493_s3 + $0x10] sm:$0xff] }
  0x77   : > { %4118 = vmatpush1.bf16.msra.mxu0 %v4943_v51  ;;  %4150 = vmatpush1.bf16.msra.mxu1 %v4139_v4 }
  0x78   : > { %4120 = vmatprep.subr.bf16.mxu0 %v4119_v63  ;;  %4152 = vmatprep.subr.bf16.mxu1 %v4151_v14 }
  0x7b   : > { %4122 = vmatpush1.bf16.msra.mxu0 %v4111_v55  ;;  %4154 = vmatpush1.bf16.msra.mxu1 %v4143_v8 }
  0x7c   : > { %4155 = vmatprep.subr.bf16.mxu0 %v4690_v15  ;;  %4190 = vmatprep.subr.bf16.mxu1 %v4690_v15 }
  0x7e   : > { %958 = vmatmul.mubr.f32.vlgmr.msra.gmra.mrb[4].mxu0 %v4951_v54  ;;  %1035 = vmatmul.mubr.f32.vlgmr.msra.gmra.mrb[4].mxu1 %v4951_v54 }
  0x7f   : > { %963 = vmatprep.mubr.f32.mxu0 %v4688_v0  ;;  %1040 = vmatprep.mubr.f32.mxu1 %v4688_v0 }
  0x80   : > { %4156 = vmatpush1.bf16.msra.mxu0 %v4690_v15  ;;  %4191 = vmatpush1.bf16.msra.mxu1 %v4690_v15 }
  0x81   : > { %4157 = vmatprep.subr.bf16.mxu0 %v4690_v15  ;;  %4192 = vmatprep.subr.bf16.mxu1 %v4690_v15 }
  0x82   : > { %964 = vmatmul.mubr.f32.gmra.mrb[6].mxu0 %v4964_v58  ;;  %1041 = vmatmul.mubr.f32.gmra.mrb[6].mxu1 %v4964_v58 }
  0x83   : > { %3890 = vmatprep.mubr.msk.f32.mxu0 %vm1623_vm0, %v5025_v16  ;;  %3892 = vmatprep.mubr.msk.f32.mxu1 %vm1623_vm0, %v5025_v16 }
  0x84   : > { %4158 = vmatpush1.bf16.msra.mxu0 %v4690_v15  ;;  %4193 = vmatpush1.bf16.msra.mxu1 %v4690_v15 }
  0x85   : > { %4159 = vmatprep.subr.bf16.mxu0 %v4690_v15 }
  0x88   : > { %4160 = vmatpush1.bf16.msra.mxu0 %v4690_v15 }
  0x89   : > { %4161 = vmatprep.subr.bf16.mxu0 %v4690_v15 }
  0x8c   : > { %4162 = vmatpush1.bf16.msra.mxu0 %v4690_v15 }
  0xc4   : > { %v732_v25 = vpop.permute.xlu0 %731 }
  0xc8   : > { %v737_v33 = vpop.permute.xlu0 %736 }
 0x131   : > { %v805_v26 = vpop.f32.mrb[0].mxu0  ;;  %v882_v28 = vpop.f32.mrb[0].mxu1 }
 0x132   : > { %v807_v27 = vpop.f32.mrb[1].mxu0  ;;  %v883_v29 = vadd.f32 %v882_v28, %v732_v25  ;;  %v884_v30 = vpop.f32.mrb[1].mxu1  ;;  %v806_v31 = vadd.f32 %v805_v26, %v732_v25 }
 0x133   : > { %v885_v32 = vadd.f32 %v884_v30, %v732_v25  ;;  %v808_v34 = vadd.f32 %v807_v27, %v732_v25 }
 0x134   : > { %v1049_v40 = vmax.f32 %v883_v29, 0.0  ;;  %v1047_v43 = vmax.f32 %v806_v31, 0.0 }
 0x135   : > { %v811_v35 = vpop.f32.mrb[2].mxu0  ;;  %v888_v38 = vpop.f32.mrb[2].mxu1  ;;  %v1050_v45 = vmax.f32 %v885_v32, 0.0  ;;  %v1048_v47 = vmax.f32 %v808_v34, 0.0 }
 0x136   : > { %v812_v36 = vadd.f32 %v811_v35, %v737_v33  ;;  %v813_v37 = vpop.f32.mrb[3].mxu0  ;;  %v889_v41 = vadd.f32 %v888_v38, %v737_v33  ;;  %v890_v42 = vpop.f32.mrb[3].mxu1 }
 0x137   : > { %v814_v39 = vadd.f32 %v813_v37, %v737_v33  ;;  %v891_v46 = vadd.f32 %v890_v42, %v737_v33 }
 0x138   : > { %v1055_v44 = vmax.f32 %v812_v36, 0.0  ;;  %v1057_v49 = vmax.f32 %v889_v41, 0.0 }
 0x139   : > { %v1056_v48 = vmax.f32 %v814_v39, 0.0  ;;  %v1058_v51 = vmax.f32 %v891_v46, 0.0 }
 0x13a   : > { %v5055_v50 = vpack.c.bf16 %v1055_v44, %v1047_v43  ;;  %v5059_v53 = vpack.c.bf16 %v1057_v49, %v1049_v40 }
 0x13b   : > { %v5057_v52 = vpack.c.bf16 %v1056_v48, %v1048_v47  ;;  %v5061_v54 = vpack.c.bf16 %v1058_v51, %v1050_v45 }
 0x13c   : > { %4164 = vmatprep.subr.bf16.mxu0 %v5055_v50  ;;  %4195 = vmatprep.subr.bf16.mxu1 %v5055_v50 }
 0x13d   : > { %4165 = vmatpush1.bf16.msra.mxu0 %v4690_v15  ;;  %4196 = vmatpush1.bf16.msra.mxu1 %v4690_v15 }
 0x13e   : > { %4167 = vmatprep.subr.bf16.mxu0 %v5057_v52  ;;  %4198 = vmatprep.subr.bf16.mxu1 %v5057_v52 }
 0x141   : > { %4169 = vmatpush1.bf16.msra.mxu0 %v5055_v50  ;;  %4200 = vmatpush1.bf16.msra.mxu1 %v5055_v50 }
 0x142   : > { %4171 = vmatprep.subr.bf16.mxu0 %v5059_v53  ;;  %4202 = vmatprep.subr.bf16.mxu1 %v5059_v53 }
 0x145   : > { %4173 = vmatpush1.bf16.msra.mxu0 %v5057_v52  ;;  %4204 = vmatpush1.bf16.msra.mxu1 %v5057_v52 }
 0x146   : > { %4175 = vmatprep.subr.bf16.mxu0 %v5061_v54  ;;  %4206 = vmatprep.subr.bf16.mxu1 %v5061_v54 }
 0x149   : > { %4177 = vmatpush1.bf16.msra.mxu0 %v5059_v53  ;;  %4208 = vmatpush1.bf16.msra.mxu1 %v5059_v53 }
 0x151   : > { %v959_v55 = vpop.f32.mrb[4].mxu0  ;;  %v1036_v56 = vpop.f32.mrb[4].mxu1 }
 0x152   : > { %v961_v57 = vpop.f32.mrb[5].mxu0  ;;  %v1038_v58 = vpop.f32.mrb[5].mxu1  ;;  %v960_v59 = vadd.f32 %v959_v55, %v732_v25  ;;  %v1037_v60 = vadd.f32 %v1036_v56, %v732_v25 }
 0x153   : > { %v962_v61 = vadd.f32 %v961_v57, %v732_v25  ;;  %v1039_v63 = vadd.f32 %v1038_v58, %v732_v25  ;;  %v1616_v25 = vpop.permute.xlu1 %1615 }
 0x154   : > { %v1051_v7 = vmax.f32 %v960_v59, 0.0  ;;  %v1053_v10 = vmax.f32 %v1037_v60, 0.0 }
 0x155   : > { %v965_v62 = vpop.f32.mrb[6].mxu0  ;;  %v1042_v2 = vpop.f32.mrb[6].mxu1  ;;  %v1052_v11 = vmax.f32 %v962_v61, 0.0  ;;  %v1054_v14 = vmax.f32 %v1039_v63, 0.0 }
 0x156   : > { %v966_v1 = vadd.f32 %v965_v62, %v737_v33  ;;  %v967_v3 = vpop.f32.mrb[7].mxu0  ;;  %v1043_v4 = vadd.f32 %v1042_v2, %v737_v33  ;;  %v1044_v6 = vpop.f32.mrb[7].mxu1 }
 0x157   : > { %v968_v5 = vadd.f32 %v967_v3, %v737_v33  ;;  %v1045_v9 = vadd.f32 %v1044_v6, %v737_v33  ;;  %v1621_v29 = vpop.permute.xlu1 %1620 }
 0x158   : > { %v1059_v8 = vmax.f32 %v966_v1, 0.0  ;;  %v1061_v12 = vmax.f32 %v1043_v4, 0.0 }
 0x159   : > { %v1060_v13 = vmax.f32 %v968_v5, 0.0  ;;  %v1062_v18 = vmax.f32 %v1045_v9, 0.0 }
 0x15a   : > { %v4178_v17 = vpack.c.bf16 %v1059_v8, %v1051_v7  ;;  %v4186_v19 = vpack.c.bf16 %v1061_v12, %v1053_v10 }
 0x15b   : > { %v4182_v20 = vpack.c.bf16 %v1060_v13, %v1052_v11  ;;  %v4221_v21 = vpack.c.bf16 %v1062_v18, %v1054_v14 }
 0x15c   : > { %4179 = vmatprep.subr.bf16.mxu0 %v4178_v17  ;;  %4210 = vmatprep.subr.bf16.mxu1 %v4178_v17 }
 0x15d   : > { %4181 = vmatpush1.bf16.msra.mxu0 %v5061_v54  ;;  %4212 = vmatpush1.bf16.msra.mxu1 %v5061_v54 }
 0x15e   : > { %4183 = vmatprep.subr.bf16.mxu0 %v4182_v20  ;;  %4214 = vmatprep.subr.bf16.mxu1 %v4182_v20 }
 0x161   : > { %4185 = vmatpush1.bf16.msra.mxu0 %v4178_v17  ;;  %4216 = vmatpush1.bf16.msra.mxu1 %v4178_v17 }
 0x162   : > { %4187 = vmatprep.subr.bf16.mxu0 %v4186_v19  ;;  %4218 = vmatprep.subr.bf16.mxu1 %v4186_v19 }
 0x165   : > { %4189 = vmatpush1.bf16.msra.mxu0 %v4182_v20  ;;  %4220 = vmatpush1.bf16.msra.mxu1 %v4182_v20 }
 0x166   : > { %4222 = vmatprep.subr.bf16.mxu1 %v4221_v21  ;;  %4229 = vmatprep.subr.bf16.mxu0 %v5055_v50 }
 0x168   : > { %1695 = vmatmul.mubr.f32.vlgmr.msra.gmra.mrb[8].mxu0 %v1431_v22 }
 0x169   : > { %4224 = vmatpush1.bf16.msra.mxu1 %v4186_v19  ;;  %4230 = vmatpush1.bf16.msra.mxu0 %v4690_v15 }
 0x16a   : > { %4232 = vmatprep.subr.bf16.mxu0 %v5057_v52  ;;  %3891 = vmatprep.mubr.msk.f32.mxu0 %vm1623_vm0, %v1434_v23 }
 0x16b   : > { %4225 = vmatprep.subr.bf16.mxu1 %v4690_v15 }
 0x16c   : > { %1701 = vmatmul.mubr.f32.gmra.mrb[10].mxu0 %v1433_v24 }
 0x16d   : > { %4227 = vmatpush1.bf16.msra.mxu1 %v4221_v21  ;;  %4234 = vmatpush1.bf16.msra.mxu0 %v5055_v50 }
 0x16e   : > { %4236 = vmatprep.subr.bf16.mxu0 %v5059_v53  ;;  %4263 = vmatprep.subr.bf16.mxu1 %v5059_v53 }
 0x16f   : > { %3894 = vmatprep.mubr.msk.f32.mxu0 %vm1623_vm0, %v5025_v16 }
 0x170   : > { %1772 = vmatmul.mubr.f32.vlgmr.msra.gmra.mrb[8].mxu1 %v1431_v22 }
 0x171   : > { %4238 = vmatpush1.bf16.msra.mxu0 %v5057_v52  ;;  %4265 = vmatpush1.bf16.msra.mxu1 %v5057_v52 }
 0x172   : > { %4240 = vmatprep.subr.bf16.mxu0 %v5061_v54  ;;  %4267 = vmatprep.subr.bf16.mxu1 %v5061_v54 }
 0x173   : > { %3893 = vmatprep.mubr.msk.f32.mxu1 %vm1623_vm0, %v1434_v23 }
 0x174   : > { %1778 = vmatmul.mubr.f32.gmra.mrb[10].mxu1 %v1433_v24 }
 0x175   : > { %4242 = vmatpush1.bf16.msra.mxu0 %v5059_v53  ;;  %4269 = vmatpush1.bf16.msra.mxu1 %v5059_v53 }
 0x176   : > { %4244 = vmatprep.subr.bf16.mxu0 %v4178_v17  ;;  %4271 = vmatprep.subr.bf16.mxu1 %v4178_v17 }
 0x177   : > { %3896 = vmatprep.mubr.msk.f32.mxu1 %vm1623_vm0, %v5025_v16  ;;  %v5130_v16 = vld [vmem:[%s5495_s5 + $0x8] sm:$0xff] }
 0x179   : > { %4246 = vmatpush1.bf16.msra.mxu0 %v5061_v54  ;;  %4273 = vmatpush1.bf16.msra.mxu1 %v5061_v54 }
 0x17a   : > { %4248 = vmatprep.subr.bf16.mxu0 %v4182_v20  ;;  %4275 = vmatprep.subr.bf16.mxu1 %v4182_v20 }
 0x17d   : > { %4250 = vmatpush1.bf16.msra.mxu0 %v4178_v17  ;;  %4277 = vmatpush1.bf16.msra.mxu1 %v4178_v17 }
 0x17e   : > { %4252 = vmatprep.subr.bf16.mxu0 %v4186_v19  ;;  %4279 = vmatprep.subr.bf16.mxu1 %v4186_v19 }
 0x181   : > { %4254 = vmatpush1.bf16.msra.mxu0 %v4182_v20  ;;  %4281 = vmatpush1.bf16.msra.mxu1 %v4182_v20 }
 0x182   : > { %4256 = vmatprep.subr.bf16.mxu0 %v4221_v21  ;;  %4283 = vmatprep.subr.bf16.mxu1 %v4221_v21 }
 0x185   : > { %4258 = vmatpush1.bf16.msra.mxu0 %v4186_v19  ;;  %4285 = vmatpush1.bf16.msra.mxu1 %v4186_v19 }
 0x186   : > { %4259 = vmatprep.subr.bf16.mxu0 %v4690_v15  ;;  %4286 = vmatprep.subr.bf16.mxu1 %v4690_v15 }
 0x189   : > { %4261 = vmatpush1.bf16.msra.mxu0 %v4221_v21  ;;  %4288 = vmatpush1.bf16.msra.mxu1 %v4221_v21 }
 0x18a   : > { %4289 = vmatprep.subr.bf16.mxu1 %v4690_v15  ;;  %4324 = vmatprep.subr.bf16.mxu0 %v4690_v15 }
 0x18c   : > { %1849 = vmatmul.mubr.f32.vlgmr.msra.gmra.mrb[12].mxu0 %v1431_v22  ;;  %1926 = vmatmul.mubr.f32.vlgmr.msra.gmra.mrb[12].mxu1 %v1431_v22  ;;  %v2322_v22 = vld [vmem:[%s5495_s5] sm:$0xff] }
 0x18d   : > { %3895 = vmatprep.mubr.msk.f32.mxu0 %vm1623_vm0, %v1434_v23  ;;  %3897 = vmatprep.mubr.msk.f32.mxu1 %vm1623_vm0, %v1434_v23  ;;  %v2325_v23 = vld [vmem:[%s5495_s5 + $0x18] sm:$0xff] }
 0x18e   : > { %4290 = vmatpush1.bf16.msra.mxu1 %v4690_v15  ;;  %4325 = vmatpush1.bf16.msra.mxu0 %v4690_v15 }
 0x18f   : > { %4291 = vmatprep.subr.bf16.mxu1 %v4690_v15  ;;  %4326 = vmatprep.subr.bf16.mxu0 %v4690_v15 }
 0x190   : > { %1855 = vmatmul.mubr.f32.gmra.mrb[14].mxu0 %v1433_v24  ;;  %1932 = vmatmul.mubr.f32.gmra.mrb[14].mxu1 %v1433_v24  ;;  %v2324_v24 = vld [vmem:[%s5495_s5 + $0x10] sm:$0xff] }
 0x191   : > { %3898 = vmatprep.mubr.msk.f32.mxu1 %vm1623_vm0, %v5130_v16  ;;  %3900 = vmatprep.mubr.msk.f32.mxu0 %vm1623_vm0, %v5130_v16 }
 0x192   : > { %4292 = vmatpush1.bf16.msra.mxu1 %v4690_v15  ;;  %4327 = vmatpush1.bf16.msra.mxu0 %v4690_v15 }
 0x193   : > { %4293 = vmatprep.subr.bf16.mxu1 %v4690_v15 }
 0x196   : > { %4294 = vmatpush1.bf16.msra.mxu1 %v4690_v15 }
 0x197   : > { %4295 = vmatprep.subr.bf16.mxu1 %v4690_v15 }
 0x19a   : > { %4296 = vmatpush1.bf16.msra.mxu1 %v4690_v15 }
 0x23b   : > { %v1696_v26 = vpop.f32.mrb[8].mxu0 }
 0x23c   : > { %v1698_v27 = vpop.f32.mrb[9].mxu0  ;;  %v1697_v28 = vadd.f32 %v1696_v26, %v1616_v25  ;;  %v5198_v26 = vpop.permute.xlu0 %2506 }
 0x23d   : > { %v1699_v30 = vadd.f32 %v1698_v27, %v1616_v25  ;;  %v5201_v27 = vpop.permute.xlu1 %2511 }
 0x23e   : > { %v1938_v35 = vmax.f32 %v1697_v28, 0.0 }
 0x23f   : > { %v1702_v31 = vpop.f32.mrb[10].mxu0  ;;  %v1939_v37 = vmax.f32 %v1699_v30, 0.0 }
 0x240   : > { %v1703_v32 = vadd.f32 %v1702_v31, %v1621_v29  ;;  %v1704_v33 = vpop.f32.mrb[11].mxu0 }
 0x241   : > { %v1705_v34 = vadd.f32 %v1704_v33, %v1621_v29 }
 0x242   : > { %v1946_v36 = vmax.f32 %v1703_v32, 0.0 }
 0x243   : > { %v1947_v38 = vmax.f32 %v1705_v34, 0.0  ;;  %v1773_v39 = vpop.f32.mrb[8].mxu1 }
 0x244   : > { %v5136_v40 = vpack.c.bf16 %v1946_v36, %v1938_v35  ;;  %v1774_v41 = vadd.f32 %v1773_v39, %v1616_v25  ;;  %v1775_v42 = vpop.f32.mrb[9].mxu1 }
 0x245   : > { %v5138_v43 = vpack.c.bf16 %v1947_v38, %v1939_v37  ;;  %v1776_v44 = vadd.f32 %v1775_v42, %v1616_v25 }
 0x246   : > { %4298 = vmatprep.subr.bf16.mxu1 %v5136_v40  ;;  %4329 = vmatprep.subr.bf16.mxu0 %v5136_v40  ;;  %v1940_v46 = vmax.f32 %v1774_v41, 0.0 }
 0x247   : > { %v1779_v45 = vpop.f32.mrb[10].mxu1  ;;  %4299 = vmatpush1.bf16.msra.mxu1 %v4690_v15  ;;  %4330 = vmatpush1.bf16.msra.mxu0 %v4690_v15  ;;  %v1941_v49 = vmax.f32 %v1776_v44, 0.0 }
 0x248   : > { %v1780_v47 = vadd.f32 %v1779_v45, %v1621_v29  ;;  %4301 = vmatprep.subr.bf16.mxu1 %v5138_v43  ;;  %4332 = vmatprep.subr.bf16.mxu0 %v5138_v43  ;;  %v1781_v48 = vpop.f32.mrb[11].mxu1 }
 0x249   : > { %v1782_v50 = vadd.f32 %v1781_v48, %v1621_v29 }
 0x24a   : > { %v1948_v51 = vmax.f32 %v1780_v47, 0.0 }
 0x24b   : > { %v1949_v52 = vmax.f32 %v1782_v50, 0.0  ;;  %4303 = vmatpush1.bf16.msra.mxu1 %v5136_v40  ;;  %4334 = vmatpush1.bf16.msra.mxu0 %v5136_v40 }
 0x24c   : > { %v5148_v53 = vpack.c.bf16 %v1948_v51, %v1940_v46 }
 0x24d   : > { %v5150_v54 = vpack.c.bf16 %v1949_v52, %v1941_v49 }
 0x24e   : > { %4305 = vmatprep.subr.bf16.mxu1 %v5148_v53  ;;  %4336 = vmatprep.subr.bf16.mxu0 %v5148_v53 }
 0x24f   : > { %4307 = vmatpush1.bf16.msra.mxu1 %v5138_v43  ;;  %4338 = vmatpush1.bf16.msra.mxu0 %v5138_v43 }
 0x250   : > { %4309 = vmatprep.subr.bf16.mxu1 %v5150_v54  ;;  %4340 = vmatprep.subr.bf16.mxu0 %v5150_v54 }
 0x253   : > { %4311 = vmatpush1.bf16.msra.mxu1 %v5148_v53  ;;  %4342 = vmatpush1.bf16.msra.mxu0 %v5148_v53 }
 0x25f   : > { %v1850_v55 = vpop.f32.mrb[12].mxu0  ;;  %v1927_v56 = vpop.f32.mrb[12].mxu1 }
 0x260   : > { %v1852_v57 = vpop.f32.mrb[13].mxu0  ;;  %v1929_v58 = vpop.f32.mrb[13].mxu1  ;;  %v1851_v59 = vadd.f32 %v1850_v55, %v1616_v25  ;;  %v1928_v60 = vadd.f32 %v1927_v56, %v1616_v25  ;;  %v5233_v55 = vld [vmem:[%s5497_s7 + $0x8] sm:$0xff]  ;;  %v5238_v56 = vld [vmem:[%s5497_s7 + $0x30] sm:$0xff] }
 0x261   : > { %v1853_v61 = vadd.f32 %v1852_v57, %v1616_v25  ;;  %v1930_v62 = vadd.f32 %v1929_v58, %v1616_v25  ;;  %v2934_v57 = vld [vmem:[%s5497_s7 + $0x10] sm:$0xff]  ;;  %v5253_v58 = vld [vmem:[%s5497_s7 + $0x38] sm:$0xff] }
 0x262   : > { %v1942_v8 = vmax.f32 %v1851_v59, 0.0  ;;  %v1944_v9 = vmax.f32 %v1928_v60, 0.0 }
 0x263   : > { %v1856_v63 = vpop.f32.mrb[14].mxu0  ;;  %v1933_v1 = vpop.f32.mrb[14].mxu1  ;;  %v1943_v12 = vmax.f32 %v1853_v61, 0.0  ;;  %v1945_v13 = vmax.f32 %v1930_v62, 0.0  ;;  %v2935_v61 = vld [vmem:[%s5497_s7 + $0x18] sm:$0xff] }
 0x264   : > { %v1857_v2 = vadd.f32 %v1856_v63, %v1621_v29  ;;  %v1934_v3 = vadd.f32 %v1933_v1, %v1621_v29  ;;  %v1858_v4 = vpop.f32.mrb[15].mxu0  ;;  %v1935_v5 = vpop.f32.mrb[15].mxu1 }
 0x265   : > { %v1859_v6 = vadd.f32 %v1858_v4, %v1621_v29  ;;  %v1936_v7 = vadd.f32 %v1935_v5, %v1621_v29 }
 0x266   : > { %v1950_v10 = vmax.f32 %v1857_v2, 0.0  ;;  %v1952_v11 = vmax.f32 %v1934_v3, 0.0 }
 0x267   : > { %v1951_v14 = vmax.f32 %v1859_v6, 0.0  ;;  %v1953_v17 = vmax.f32 %v1936_v7, 0.0  ;;  %v2936_v7 = vld [vmem:[%s5497_s7 + $0x20] sm:$0xff] }
 0x268   : > { %v4312_v18 = vpack.c.bf16 %v1950_v10, %v1942_v8  ;;  %v4320_v19 = vpack.c.bf16 %v1952_v11, %v1944_v9 }
 0x269   : > { %v4316_v20 = vpack.c.bf16 %v1951_v14, %v1943_v12  ;;  %v4355_v21 = vpack.c.bf16 %v1953_v17, %v1945_v13 }
 0x26a   : > { %4313 = vmatprep.subr.bf16.mxu1 %v4312_v18  ;;  %4344 = vmatprep.subr.bf16.mxu0 %v4312_v18 }
 0x26b   : > { %4315 = vmatpush1.bf16.msra.mxu1 %v5150_v54  ;;  %4346 = vmatpush1.bf16.msra.mxu0 %v5150_v54 }
 0x26c   : > { %4317 = vmatprep.subr.bf16.mxu1 %v4316_v20  ;;  %4348 = vmatprep.subr.bf16.mxu0 %v4316_v20 }
 0x26f   : > { %4319 = vmatpush1.bf16.msra.mxu1 %v4312_v18  ;;  %4350 = vmatpush1.bf16.msra.mxu0 %v4312_v18 }
 0x270   : > { %4321 = vmatprep.subr.bf16.mxu1 %v4320_v19  ;;  %4352 = vmatprep.subr.bf16.mxu0 %v4320_v19 }
 0x273   : > { %4323 = vmatpush1.bf16.msra.mxu1 %v4316_v20  ;;  %4354 = vmatpush1.bf16.msra.mxu0 %v4316_v20 }
 0x274   : > { %4356 = vmatprep.subr.bf16.mxu0 %v4355_v21  ;;  %4363 = vmatprep.subr.bf16.mxu1 %v5136_v40 }
 0x276   : > { %2585 = vmatmul.mubr.f32.vlgmr.msra.gmra.mrb[16].mxu1 %v2322_v22 }
 0x277   : > { %4358 = vmatpush1.bf16.msra.mxu0 %v4320_v19  ;;  %4364 = vmatpush1.bf16.msra.mxu1 %v4690_v15 }
 0x278   : > { %4366 = vmatprep.subr.bf16.mxu1 %v5138_v43  ;;  %3899 = vmatprep.mubr.msk.f32.mxu1 %vm1623_vm0, %v2325_v23 }
 0x279   : > { %4359 = vmatprep.subr.bf16.mxu0 %v4690_v15 }
 0x27a   : > { %2591 = vmatmul.mubr.f32.gmra.mrb[18].mxu1 %v2324_v24 }
 0x27b   : > { %4361 = vmatpush1.bf16.msra.mxu0 %v4355_v21  ;;  %4368 = vmatpush1.bf16.msra.mxu1 %v5136_v40 }
 0x27c   : > { %4370 = vmatprep.subr.bf16.mxu1 %v5148_v53  ;;  %4397 = vmatprep.subr.bf16.mxu0 %v5148_v53 }
 0x27d   : > { %3902 = vmatprep.mubr.msk.f32.mxu1 %vm1623_vm0, %v5130_v16 }
 0x27e   : > { %2662 = vmatmul.mubr.f32.vlgmr.msra.gmra.mrb[16].mxu0 %v2322_v22 }
 0x27f   : > { %4372 = vmatpush1.bf16.msra.mxu1 %v5138_v43  ;;  %4399 = vmatpush1.bf16.msra.mxu0 %v5138_v43 }
 0x280   : > { %4374 = vmatprep.subr.bf16.mxu1 %v5150_v54  ;;  %4401 = vmatprep.subr.bf16.mxu0 %v5150_v54 }
 0x281   : > { %3901 = vmatprep.mubr.msk.f32.mxu0 %vm1623_vm0, %v2325_v23 }
 0x282   : > { %2668 = vmatmul.mubr.f32.gmra.mrb[18].mxu0 %v2324_v24 }
 0x283   : > { %4376 = vmatpush1.bf16.msra.mxu1 %v5148_v53  ;;  %4403 = vmatpush1.bf16.msra.mxu0 %v5148_v53  ;;  %v5217_v53 = vld [vmem:[%s5497_s7] sm:$0xff] }
 0x284   : > { %4378 = vmatprep.subr.bf16.mxu1 %v4312_v18  ;;  %4405 = vmatprep.subr.bf16.mxu0 %v4312_v18 }
 0x285   : > { %3904 = vmatprep.mubr.msk.f32.mxu0 %vm1623_vm0, %v5130_v16 }
 0x287   : > { %4380 = vmatpush1.bf16.msra.mxu1 %v5150_v54  ;;  %4407 = vmatpush1.bf16.msra.mxu0 %v5150_v54  ;;  %v5222_v54 = vld [vmem:[%s5497_s7 + $0x28] sm:$0xff] }
 0x288   : > { %4382 = vmatprep.subr.bf16.mxu1 %v4316_v20  ;;  %4409 = vmatprep.subr.bf16.mxu0 %v4316_v20 }
 0x28b   : > { %4384 = vmatpush1.bf16.msra.mxu1 %v4312_v18  ;;  %4411 = vmatpush1.bf16.msra.mxu0 %v4312_v18 }
 0x28c   : > { %4386 = vmatprep.subr.bf16.mxu1 %v4320_v19  ;;  %4413 = vmatprep.subr.bf16.mxu0 %v4320_v19 }
 0x28f   : > { %4388 = vmatpush1.bf16.msra.mxu1 %v4316_v20  ;;  %4415 = vmatpush1.bf16.msra.mxu0 %v4316_v20 }
 0x290   : > { %4390 = vmatprep.subr.bf16.mxu1 %v4355_v21  ;;  %4417 = vmatprep.subr.bf16.mxu0 %v4355_v21 }
 0x293   : > { %4392 = vmatpush1.bf16.msra.mxu1 %v4320_v19  ;;  %4419 = vmatpush1.bf16.msra.mxu0 %v4320_v19 }
 0x294   : > { %4393 = vmatprep.subr.bf16.mxu1 %v4690_v15  ;;  %4420 = vmatprep.subr.bf16.mxu0 %v4690_v15 }
 0x297   : > { %4395 = vmatpush1.bf16.msra.mxu1 %v4355_v21  ;;  %4422 = vmatpush1.bf16.msra.mxu0 %v4355_v21 }
 0x29a   : > { %2739 = vmatmul.mubr.f32.vlgmr.msra.gmra.mrb[20].mxu1 %v2322_v22  ;;  %2816 = vmatmul.mubr.f32.vlgmr.msra.gmra.mrb[20].mxu0 %v2322_v22 }
 0x29b   : > { %3903 = vmatprep.mubr.msk.f32.mxu1 %vm1623_vm0, %v2325_v23  ;;  %3905 = vmatprep.mubr.msk.f32.mxu0 %vm1623_vm0, %v2325_v23 }
 0x29e   : > { %2745 = vmatmul.mubr.f32.gmra.mrb[22].mxu1 %v2324_v24  ;;  %2822 = vmatmul.mubr.f32.gmra.mrb[22].mxu0 %v2324_v24 }
 0x29f   : > { %3112 = vmatprep.mubr.f32.mxu0 %v4688_v0  ;;  %3142 = vmatprep.mubr.f32.mxu1 %v4688_v0 }
 0x349   : > { %v2586_v16 = vpop.f32.mrb[16].mxu1 }
 0x34a   : > { %v2588_v25 = vpop.f32.mrb[17].mxu1  ;;  %v2587_v15 = vadd.f32 %v2586_v16, %v5198_v26 }
 0x34b   : > { %v2589_v28 = vadd.f32 %v2588_v25, %v5198_v26 }
 0x34c   : > { %v2828_v33 = vmax.f32 %v2587_v15, 0.0  ;;  %v3580_v15 = vld [vmem:[%s5499_s9 + $0x8] sm:$0xff] }
 0x34d   : > { %v2592_v29 = vpop.f32.mrb[18].mxu1  ;;  %v2829_v35 = vmax.f32 %v2589_v28, 0.0  ;;  %v5325_v28 = vpop.permute.xlu0 %2986 }
 0x34e   : > { %v2593_v30 = vadd.f32 %v2592_v29, %v5201_v27  ;;  %v2594_v31 = vpop.f32.mrb[19].mxu1  ;;  %v5327_v29 = vpop.permute.xlu1 %2991 }
 0x34f   : > { %v2595_v32 = vadd.f32 %v2594_v31, %v5201_v27 }
 0x350   : > { %v2836_v34 = vmax.f32 %v2593_v30, 0.0 }
 0x351   : > { %v2837_v36 = vmax.f32 %v2595_v32, 0.0  ;;  %v2663_v37 = vpop.f32.mrb[16].mxu0  ;;  %v5329_v30 = vpop.permute.xlu0 %2996 }
 0x352   : > { %v4425_v38 = vpack.c.bf16 %v2836_v34, %v2828_v33  ;;  %v2665_v39 = vpop.f32.mrb[17].mxu0  ;;  %v2664_v41 = vadd.f32 %v2663_v37, %v5198_v26 }
 0x353   : > { %v4423_v40 = vpack.c.bf16 %v2837_v36, %v2829_v35  ;;  %v2666_v42 = vadd.f32 %v2665_v39, %v5198_v26 }
 0x354   : > { %v2830_v47 = vmax.f32 %v2664_v41, 0.0 }
 0x355   : > { %v2669_v43 = vpop.f32.mrb[18].mxu0  ;;  %4424 = vmatprep.subr.bf16.mxu0 %v4423_v40  ;;  %4523 = vmatprep.subr.bf16.mxu1 %v4423_v40  ;;  %v2831_v49 = vmax.f32 %v2666_v42, 0.0  ;;  %v5333_v31 = vpop.permute.xlu0 %3006 }
 0x356   : > { %v2670_v44 = vadd.f32 %v2669_v43, %v5201_v27  ;;  %v2671_v45 = vpop.f32.mrb[19].mxu0  ;;  %4426 = vmatpush1.bf16.msra.mxu0 %v4425_v38  ;;  %4526 = vmatpush1.bf16.msra.mxu1 %v4425_v38 }
 0x357   : > { %v2672_v46 = vadd.f32 %v2671_v45, %v5201_v27 }
 0x358   : > { %v2838_v48 = vmax.f32 %v2670_v44, 0.0 }
 0x359   : > { %v2839_v50 = vmax.f32 %v2672_v46, 0.0  ;;  %v5340_v44 = vpop.permute.xlu0 %3016 }
 0x35a   : > { %v4427_v51 = vpack.c.bf16 %v2838_v48, %v2830_v47 }
 0x35b   : > { %v5210_v52 = vpack.c.bf16 %v2839_v50, %v2831_v49 }
 0x35c   : > { %4428 = vmatprep.subr.bf16.mxu0 %v4427_v51  ;;  %4524 = vmatprep.subr.bf16.mxu1 %v4427_v51 }
 0x35d   : > { %4430 = vmatpush1.bf16.msra.mxu0 %v4423_v40  ;;  %4527 = vmatpush1.bf16.msra.mxu1 %v4423_v40 }
 0x35e   : > { %4432 = vmatprep.subr.bf16.mxu0 %v5210_v52  ;;  %4525 = vmatprep.subr.bf16.mxu1 %v5210_v52 }
 0x361   : > { %4434 = vmatpush1.bf16.msra.mxu0 %v4427_v51  ;;  %4528 = vmatpush1.bf16.msra.mxu1 %v4427_v51 }
 0x362   : > { %4436 = vmatprep.subr.bf16.mxu1 %v5210_v52 }
 0x364   : > { %3906 = vmatmul.mubr.msk.f32.vlgmr.msra.gmra.mrb[24].mxu0 %vm1623_vm0, %v5217_v53  ;;  %3911 = vmatmul.mubr.msk.f32.vlgmr.msra.gmra.mrb[24].mxu1 %vm1623_vm0, %v5222_v54 }
 0x365   : > { %4438 = vmatpush1.bf16.msra.mxu1 %v4427_v51  ;;  %3118 = vmatprep.mubr.f32.mxu0 %v4688_v0 }
 0x366   : > { %3148 = vmatprep.mubr.f32.mxu1 %v4688_v0 }
 0x368   : > { %3907 = vmatmul.mubr.msk.f32.gmra.mrb[26].mxu0 %vm1623_vm0, %v5233_v55  ;;  %3912 = vmatmul.mubr.msk.f32.gmra.mrb[26].mxu1 %vm1623_vm0, %v5238_v56 }
 0x369   : > { %3124 = vmatprep.mubr.f32.mxu0 %v4688_v0  ;;  %3154 = vmatprep.mubr.f32.mxu1 %v4688_v0 }
 0x36c   : > { %3908 = vmatmul.mubr.msk.f32.gmra.mrb[28].mxu0 %vm1623_vm0, %v2934_v57  ;;  %3913 = vmatmul.mubr.msk.f32.gmra.mrb[28].mxu1 %vm1623_vm0, %v5253_v58 }
 0x36d   : > { %v2740_v59 = vpop.f32.mrb[20].mxu1  ;;  %v2817_v60 = vpop.f32.mrb[20].mxu0  ;;  %3130 = vmatprep.mubr.f32.mxu0 %v4688_v0  ;;  %3225 = vmatprep.mubr.f32.mxu1 %v4688_v0 }
 0x36e   : > { %v2742_v62 = vpop.f32.mrb[21].mxu1  ;;  %v2819_v63 = vpop.f32.mrb[21].mxu0  ;;  %v2741_v1 = vadd.f32 %v2740_v59, %v5198_v26  ;;  %v2818_v2 = vadd.f32 %v2817_v60, %v5198_v26 }
 0x36f   : > { %v2743_v3 = vadd.f32 %v2742_v62, %v5198_v26  ;;  %v2820_v4 = vadd.f32 %v2819_v63, %v5198_v26 }
 0x370   : > { %3909 = vmatmul.mubr.msk.f32.gmra.mrb[30].mxu0 %vm1623_vm0, %v2935_v61  ;;  %v2832_v14 = vmax.f32 %v2741_v1, 0.0  ;;  %v2834_v17 = vmax.f32 %v2818_v2, 0.0 }
 0x371   : > { %v2746_v5 = vpop.f32.mrb[22].mxu1  ;;  %v2823_v6 = vpop.f32.mrb[22].mxu0  ;;  %3136 = vmatprep.mubr.f32.mxu0 %v4688_v0  ;;  %v2833_v20 = vmax.f32 %v2743_v3, 0.0  ;;  %v2835_v21 = vmax.f32 %v2820_v4, 0.0 }
 0x372   : > { %v2747_v8 = vadd.f32 %v2746_v5, %v5201_v27  ;;  %v2824_v9 = vadd.f32 %v2823_v6, %v5201_v27  ;;  %v2748_v10 = vpop.f32.mrb[23].mxu1  ;;  %v2825_v11 = vpop.f32.mrb[23].mxu0 }
 0x373   : > { %v2749_v12 = vadd.f32 %v2748_v10, %v5201_v27  ;;  %v2826_v13 = vadd.f32 %v2825_v11, %v5201_v27  ;;  %v3581_v27 = vld [vmem:[%s5499_s9 + $0x10] sm:$0xff] }
 0x374   : > { %v2840_v18 = vmax.f32 %v2747_v8, 0.0  ;;  %v2842_v19 = vmax.f32 %v2824_v9, 0.0  ;;  %3910 = vmatmul.mubr.msk.f32.gmra.mrb[32].mxu0 %vm1623_vm0, %v2936_v7 }
 0x375   : > { %v2841_v22 = vmax.f32 %v2749_v12, 0.0  ;;  %v2843_v23 = vmax.f32 %v2826_v13, 0.0  ;;  %3338 = vmatprep.mubr.f32.mxu0 %v4688_v0 }
 0x376   : > { %v4439_v24 = vpack.c.bf16 %v2840_v18, %v2832_v14  ;;  %v4451_v16 = vpack.c.bf16 %v2842_v19, %v2834_v17 }
 0x377   : > { %v4443_v25 = vpack.c.bf16 %v2841_v22, %v2833_v20  ;;  %v4455_v26 = vpack.c.bf16 %v2843_v23, %v2835_v21 }
 0x378   : > { %4440 = vmatprep.subr.bf16.mxu1 %v4439_v24 }
 0x379   : > { %4442 = vmatpush1.bf16.msra.mxu1 %v5210_v52  ;;  %4448 = vmatprep.subr.bf16.mxu0 %v4443_v25 }
 0x37a   : > { %4444 = vmatprep.subr.bf16.mxu1 %v4443_v25  ;;  %4450 = vmatpush1.bf16.msra.mxu0 %v4439_v24 }
 0x37b   : > { %4452 = vmatprep.subr.bf16.mxu0 %v4451_v16 }
 0x37d   : > { %4446 = vmatpush1.bf16.msra.mxu1 %v4439_v24 }
 0x37e   : > { %4454 = vmatpush1.bf16.msra.mxu0 %v4443_v25 }
 0x37f   : > { %4456 = vmatprep.subr.bf16.mxu0 %v4455_v26 }
 0x380   : > { %3914 = vmatmul.mubr.msk.f32.vlgmr.msra.gmra.mrb[30].mxu1 %vm1623_vm0, %v5217_v53 }
 0x381   : > { %3231 = vmatprep.mubr.f32.mxu1 %v4688_v0 }
 0x382   : > { %4458 = vmatpush1.bf16.msra.mxu0 %v4451_v16 }
 0x384   : > { %3915 = vmatmul.mubr.msk.f32.gmra.mrb[32].mxu1 %vm1623_vm0, %v5233_v55 }
 0x385   : > { %3922 = vmatmul.mubr.msk.f32.vlgmr.msra.gmra.mrb[34].mxu0 %vm1623_vm0, %v5217_v53  ;;  %3237 = vmatprep.mubr.f32.mxu1 %v4688_v0 }
 0x386   : > { %3344 = vmatprep.mubr.f32.mxu0 %v4688_v0 }
 0x388   : > { %3916 = vmatmul.mubr.msk.f32.gmra.mrb[34].mxu1 %vm1623_vm0, %v2934_v57 }
 0x389   : > { %3923 = vmatmul.mubr.msk.f32.gmra.mrb[36].mxu0 %vm1623_vm0, %v5233_v55  ;;  %3243 = vmatprep.mubr.f32.mxu1 %v4688_v0 }
 0x38a   : > { %3350 = vmatprep.mubr.f32.mxu0 %v4688_v0 }
 0x38c   : > { %3917 = vmatmul.mubr.msk.f32.gmra.mrb[36].mxu1 %vm1623_vm0, %v2935_v61 }
 0x38d   : > { %3924 = vmatmul.mubr.msk.f32.gmra.mrb[38].mxu0 %vm1623_vm0, %v2934_v57  ;;  %3249 = vmatprep.mubr.f32.mxu1 %v4688_v0 }
 0x38e   : > { %3356 = vmatprep.mubr.f32.mxu0 %v4688_v0 }
 0x390   : > { %3918 = vmatmul.mubr.msk.f32.gmra.mrb[38].mxu1 %vm1623_vm0, %v2936_v7 }
 0x391   : > { %3925 = vmatmul.mubr.msk.f32.gmra.mrb[40].mxu0 %vm1623_vm0, %v2935_v61  ;;  %3255 = vmatprep.mubr.f32.mxu1 %v4688_v0 }
 0x392   : > { %3362 = vmatprep.mubr.f32.mxu0 %v4688_v0 }
 0x394   : > { %3919 = vmatmul.mubr.msk.f32.gmra.mrb[40].mxu1 %vm1623_vm0, %v5222_v54 }
 0x395   : > { %3926 = vmatmul.mubr.msk.f32.gmra.mrb[42].mxu0 %vm1623_vm0, %v2936_v7  ;;  %3261 = vmatprep.mubr.f32.mxu1 %v4688_v0 }
 0x396   : > { %3368 = vmatprep.mubr.f32.mxu0 %v4688_v0 }
 0x398   : > { %3920 = vmatmul.mubr.msk.f32.gmra.mrb[42].mxu1 %vm1623_vm0, %v5238_v56 }
 0x399   : > { %3927 = vmatmul.mubr.msk.f32.gmra.mrb[44].mxu0 %vm1623_vm0, %v5222_v54  ;;  %3267 = vmatprep.mubr.f32.mxu1 %v4688_v0 }
 0x39a   : > { %3374 = vmatprep.mubr.f32.mxu0 %v4688_v0 }
 0x39c   : > { %3921 = vmatmul.mubr.msk.f32.gmra.mrb[44].mxu1 %vm1623_vm0, %v5253_v58 }
 0x39d   : > { %3928 = vmatmul.mubr.msk.f32.gmra.mrb[46].mxu0 %vm1623_vm0, %v5238_v56  ;;  %3709 = vmatprep.mubr.f32.mxu1 %v3580_v15 }
 0x39e   : > { %3380 = vmatprep.mubr.f32.mxu0 %v4688_v0  ;;  %v5331_v0 = vpop.permute.xlu1 %3001 }
 0x3a1   : > { %3929 = vmatmul.mubr.msk.f32.gmra.mrb[48].mxu0 %vm1623_vm0, %v5253_v58 }
 0x3a2   : > { %4024 = vmatprep.mubr.f32.mxu0 %v3581_v27  ;;  %v5335_v32 = vpop.permute.xlu1 %3011 }
 0x3a6   : > { %v5343_v46 = vpop.permute.xlu1 %3021 }
 0x437   : > { %v3114_v33 = vpop.f32.mrb[24].mxu0  ;;  %v3144_v34 = vpop.f32.mrb[24].mxu1 }
 0x438   : > { %v3116_v35 = vpop.f32.mrb[25].mxu0  ;;  %v3146_v36 = vpop.f32.mrb[25].mxu1  ;;  %v3115_v37 = vadd.f32 %v3114_v33, %v5325_v28  ;;  %v3145_v10 = vadd.f32 %v3144_v34, %v5335_v32 }
 0x439   : > { %v3117_v38 = vadd.f32 %v3116_v35, %v5325_v28  ;;  %v3147_v13 = vadd.f32 %v3146_v36, %v5335_v32 }
 0x43a   : > { %v3387_v47 = vmax.f32 %v3115_v37, 0.0  ;;  %v3417_v24 = vmax.f32 %v3145_v10, 0.0 }
 0x43b   : > { %v3120_v39 = vpop.f32.mrb[26].mxu0  ;;  %v3150_v40 = vpop.f32.mrb[26].mxu1  ;;  %v3388_v50 = vmax.f32 %v3117_v38, 0.0  ;;  %v3418_v25 = vmax.f32 %v3147_v13, 0.0 }
 0x43c   : > { %v3121_v41 = vadd.f32 %v3120_v39, %v5327_v29  ;;  %v3122_v42 = vpop.f32.mrb[27].mxu0  ;;  %v3152_v43 = vpop.f32.mrb[27].mxu1  ;;  %v3151_v49 = vadd.f32 %v3150_v40, %v5340_v44 }
 0x43d   : > { %v3123_v45 = vadd.f32 %v3122_v42, %v5327_v29  ;;  %v3153_v52 = vadd.f32 %v3152_v43, %v5340_v44 }
 0x43e   : > { %v3393_v48 = vmax.f32 %v3121_v41, 0.0  ;;  %v3423_v61 = vmax.f32 %v3151_v49, 0.0 }
 0x43f   : > { %v3394_v51 = vmax.f32 %v3123_v45, 0.0  ;;  %v3126_v53 = vpop.f32.mrb[28].mxu0  ;;  %v3156_v54 = vpop.f32.mrb[28].mxu1  ;;  %v3424_v1 = vmax.f32 %v3153_v52, 0.0 }
 0x440   : > { %v5347_v55 = vpack.c.bf16 %v3393_v48, %v3387_v47  ;;  %v3157_v56 = vadd.f32 %v3156_v54, %v5343_v46  ;;  %v3128_v57 = vpop.f32.mrb[29].mxu0  ;;  %v3158_v58 = vpop.f32.mrb[29].mxu1  ;;  %v3127_v62 = vadd.f32 %v3126_v53, %v5329_v30 }
 0x441   : > { %v5350_v59 = vpack.c.bf16 %v3394_v51, %v3388_v50  ;;  %v3159_v60 = vadd.f32 %v3158_v58, %v5343_v46  ;;  %v3129_v2 = vadd.f32 %v3128_v57, %v5329_v30 }
 0x442   : > { %v3429_v63 = vmax.f32 %v3157_v56, 0.0  ;;  %v3399_v11 = vmax.f32 %v3127_v62, 0.0 }
 0x443   : > { %v3430_v3 = vmax.f32 %v3159_v60, 0.0  ;;  %v3132_v4 = vpop.f32.mrb[30].mxu0  ;;  %v3400_v14 = vmax.f32 %v3129_v2, 0.0 }
 0x444   : > { %v5355_v5 = vpack.c.bf16 %v3429_v63, %v3423_v61  ;;  %v3133_v6 = vadd.f32 %v3132_v4, %v5331_v0  ;;  %v3134_v7 = vpop.f32.mrb[31].mxu0 }
 0x445   : > { %v5358_v8 = vpack.c.bf16 %v3430_v3, %v3424_v1  ;;  %v3135_v9 = vadd.f32 %v3134_v7, %v5331_v0 }
 0x446   : > { %v3405_v12 = vmax.f32 %v3133_v6, 0.0 }
 0x447   : > { %v3406_v17 = vmax.f32 %v3135_v9, 0.0  ;;  %v3138_v18 = vpop.f32.mrb[32].mxu0 }
 0x448   : > { %v5363_v19 = vpack.c.bf16 %v3405_v12, %v3399_v11  ;;  %v3139_v20 = vadd.f32 %v3138_v18, %v5333_v31  ;;  %v3140_v21 = vpop.f32.mrb[33].mxu0 }
 0x449   : > { %v5366_v22 = vpack.c.bf16 %v3406_v17, %v3400_v14  ;;  %v3141_v23 = vadd.f32 %v3140_v21, %v5333_v31 }
 0x44a   : > { %v3411_v16 = vmax.f32 %v3139_v20, 0.0 }
 0x44b   : > { %v3412_v26 = vmax.f32 %v3141_v23, 0.0 }
 0x44c   : > { %v5369_v15 = vpack.c.bf16 %v3417_v24, %v3411_v16 }
 0x44d   : > { %v5371_v27 = vpack.c.bf16 %v3418_v25, %v3412_v26 }
 0x453   : > { %v3227_v33 = vpop.f32.mrb[30].mxu1 }
 0x454   : > { %v3229_v34 = vpop.f32.mrb[31].mxu1  ;;  %v3228_v35 = vadd.f32 %v3227_v33, %v5325_v28 }
 0x455   : > { %v3230_v36 = vadd.f32 %v3229_v34, %v5325_v28 }
 0x456   : > { %v3389_v43 = vmax.f32 %v3228_v35, 0.0 }
 0x457   : > { %v3233_v37 = vpop.f32.mrb[32].mxu1  ;;  %v3390_v47 = vmax.f32 %v3230_v36, 0.0 }
 0x458   : > { %v3234_v38 = vadd.f32 %v3233_v37, %v5327_v29  ;;  %v3235_v39 = vpop.f32.mrb[33].mxu1  ;;  %v3340_v40 = vpop.f32.mrb[34].mxu0 }
 0x459   : > { %v3236_v41 = vadd.f32 %v3235_v39, %v5327_v29  ;;  %v3342_v42 = vpop.f32.mrb[35].mxu0  ;;  %v3341_v49 = vadd.f32 %v3340_v40, %v5325_v28 }
 0x45a   : > { %v3395_v45 = vmax.f32 %v3234_v38, 0.0  ;;  %v3343_v52 = vadd.f32 %v3342_v42, %v5325_v28 }
 0x45b   : > { %v3396_v48 = vmax.f32 %v3236_v41, 0.0  ;;  %v3239_v50 = vpop.f32.mrb[34].mxu1  ;;  %v3391_v62 = vmax.f32 %v3341_v49, 0.0 }
 0x45c   : > { %v4459_v51 = vpack.c.bf16 %v3395_v45, %v3389_v43  ;;  %v3241_v53 = vpop.f32.mrb[35].mxu1  ;;  %v3346_v54 = vpop.f32.mrb[36].mxu0  ;;  %v3240_v60 = vadd.f32 %v3239_v50, %v5329_v30  ;;  %v3392_v28 = vmax.f32 %v3343_v52, 0.0 }
 0x45d   : > { %v5379_v56 = vpack.c.bf16 %v3396_v48, %v3390_v47  ;;  %v3347_v57 = vadd.f32 %v3346_v54, %v5327_v29  ;;  %v3348_v58 = vpop.f32.mrb[37].mxu0  ;;  %v3242_v63 = vadd.f32 %v3241_v53, %v5329_v30 }
 0x45e   : > { %v3349_v61 = vadd.f32 %v3348_v58, %v5327_v29  ;;  %4460 = vmatprep.subr.bf16.mxu1 %v4459_v51  ;;  %v3401_v12 = vmax.f32 %v3240_v60, 0.0 }
 0x45f   : > { %v3397_v1 = vmax.f32 %v3347_v57, 0.0  ;;  %v3245_v2 = vpop.f32.mrb[36].mxu1  ;;  %4462 = vmatpush3.bf16.msra.mxu1 %v5347_v55  ;;  %v3402_v14 = vmax.f32 %v3242_v63, 0.0 }
 0x460   : > { %v3398_v3 = vmax.f32 %v3349_v61, 0.0  ;;  %v3246_v4 = vadd.f32 %v3245_v2, %v5331_v0  ;;  %v3247_v6 = vpop.f32.mrb[37].mxu1  ;;  %v3352_v7 = vpop.f32.mrb[38].mxu0 }
 0x461   : > { %v4491_v9 = vpack.c.bf16 %v3397_v1, %v3391_v62  ;;  %v3248_v10 = vadd.f32 %v3247_v6, %v5331_v0  ;;  %v3354_v11 = vpop.f32.mrb[39].mxu0  ;;  %v3353_v18 = vadd.f32 %v3352_v7, %v5329_v30 }
 0x462   : > { %v5388_v29 = vpack.c.bf16 %v3398_v3, %v3392_v28  ;;  %v3407_v13 = vmax.f32 %v3246_v4, 0.0  ;;  %v3355_v21 = vadd.f32 %v3354_v11, %v5329_v30 }
 0x463   : > { %v3408_v17 = vmax.f32 %v3248_v10, 0.0  ;;  %v3251_v20 = vpop.f32.mrb[38].mxu1  ;;  %4492 = vmatprep.subr.bf16.mxu0 %v4491_v9  ;;  %v3403_v35 = vmax.f32 %v3353_v18, 0.0 }
 0x464   : > { %v4463_v55 = vpack.c.bf16 %v3407_v13, %v3401_v12  ;;  %v3253_v23 = vpop.f32.mrb[39].mxu1  ;;  %v3358_v24 = vpop.f32.mrb[40].mxu0  ;;  %4494 = vmatpush3.bf16.msra.mxu0 %v4491_v9  ;;  %v3252_v33 = vadd.f32 %v3251_v20, %v5333_v31  ;;  %v3404_v30 = vmax.f32 %v3355_v21, 0.0 }
 0x465   : > { %v5392_v16 = vpack.c.bf16 %v3408_v17, %v3402_v14  ;;  %v3359_v25 = vadd.f32 %v3358_v24, %v5331_v0  ;;  %v3360_v26 = vpop.f32.mrb[41].mxu0  ;;  %v3254_v36 = vadd.f32 %v3253_v23, %v5333_v31 }
 0x466   : > { %v3361_v34 = vadd.f32 %v3360_v26, %v5331_v0  ;;  %4464 = vmatprep.subr.bf16.mxu1 %v4463_v55  ;;  %v3413_v48 = vmax.f32 %v3252_v33, 0.0 }
 0x467   : > { %v3409_v37 = vmax.f32 %v3359_v25, 0.0  ;;  %v3257_v38 = vpop.f32.mrb[40].mxu1  ;;  %4466 = vmatpush3.bf16.msra.mxu1 %v5363_v19  ;;  %v3414_v50 = vmax.f32 %v3254_v36, 0.0 }
 0x468   : > { %v3410_v39 = vmax.f32 %v3361_v34, 0.0  ;;  %v3258_v40 = vadd.f32 %v3257_v38, %v5335_v32  ;;  %v3259_v41 = vpop.f32.mrb[41].mxu1  ;;  %v3364_v42 = vpop.f32.mrb[42].mxu0 }
 0x469   : > { %v4495_v43 = vpack.c.bf16 %v3409_v37, %v3403_v35  ;;  %v3260_v45 = vadd.f32 %v3259_v41, %v5335_v32  ;;  %v3366_v47 = vpop.f32.mrb[43].mxu0  ;;  %v3365_v52 = vadd.f32 %v3364_v42, %v5333_v31 }
 0x46a   : > { %v5401_v0 = vpack.c.bf16 %v3410_v39, %v3404_v30  ;;  %v3419_v49 = vmax.f32 %v3258_v40, 0.0  ;;  %v3367_v54 = vadd.f32 %v3366_v47, %v5333_v31 }
 0x46b   : > { %v3420_v51 = vmax.f32 %v3260_v45, 0.0  ;;  %v3263_v53 = vpop.f32.mrb[42].mxu1  ;;  %4496 = vmatprep.subr.bf16.mxu0 %v4495_v43  ;;  %v3415_v2 = vmax.f32 %v3365_v52, 0.0 }
 0x46c   : > { %v4467_v19 = vpack.c.bf16 %v3419_v49, %v3413_v48  ;;  %v3265_v57 = vpop.f32.mrb[43].mxu1  ;;  %v3370_v58 = vpop.f32.mrb[44].mxu0  ;;  %4498 = vmatpush3.bf16.msra.mxu0 %v4495_v43  ;;  %v3264_v63 = vadd.f32 %v3263_v53, %v5340_v44  ;;  %v3416_v31 = vmax.f32 %v3367_v54, 0.0 }
 0x46d   : > { %v4483_v60 = vpack.c.bf16 %v3420_v51, %v3414_v50  ;;  %v3371_v61 = vadd.f32 %v3370_v58, %v5335_v32  ;;  %v3372_v62 = vpop.f32.mrb[45].mxu0  ;;  %v3266_v28 = vadd.f32 %v3265_v57, %v5340_v44  ;;  %v3643_v43 = vpop.permute.xlu1 %3642 }
 0x46e   : > { %v3373_v1 = vadd.f32 %v3372_v62, %v5335_v32  ;;  %4468 = vmatprep.subr.bf16.mxu1 %v4467_v19  ;;  %v3425_v14 = vmax.f32 %v3264_v63, 0.0 }
 0x46f   : > { %v3421_v3 = vmax.f32 %v3371_v61, 0.0  ;;  %v3269_v4 = vpop.f32.mrb[44].mxu1  ;;  %4470 = vmatpush3.bf16.msra.mxu1 %v5369_v15  ;;  %v3426_v18 = vmax.f32 %v3266_v28, 0.0 }
 0x470   : > { %v3422_v6 = vmax.f32 %v3373_v1, 0.0  ;;  %v3270_v7 = vadd.f32 %v3269_v4, %v5343_v46  ;;  %v3271_v9 = vpop.f32.mrb[45].mxu1  ;;  %v3376_v10 = vpop.f32.mrb[46].mxu0 }
 0x471   : > { %v4499_v11 = vpack.c.bf16 %v3421_v3, %v3415_v2  ;;  %v3272_v12 = vadd.f32 %v3271_v9, %v5343_v46  ;;  %v3378_v13 = vpop.f32.mrb[47].mxu0  ;;  %v3377_v55 = vadd.f32 %v3376_v10, %v5340_v44 }
 0x472   : > { %v4515_v32 = vpack.c.bf16 %v3422_v6, %v3416_v31  ;;  %v3431_v17 = vmax.f32 %v3270_v7, 0.0  ;;  %v3379_v15 = vadd.f32 %v3378_v13, %v5340_v44  ;;  %v3579_v44 = vld [vmem:[%s5499_s9] sm:$0xff] }
 0x473   : > { %v3432_v20 = vmax.f32 %v3272_v12, 0.0  ;;  %4500 = vmatprep.subr.bf16.mxu0 %v4499_v11  ;;  %v3427_v34 = vmax.f32 %v3377_v55, 0.0 }
 0x474   : > { %v4471_v21 = vpack.c.bf16 %v3431_v17, %v3425_v14  ;;  %v3382_v23 = vpop.f32.mrb[48].mxu0  ;;  %4502 = vmatpush3.bf16.msra.mxu0 %v4499_v11  ;;  %v3428_v36 = vmax.f32 %v3379_v15, 0.0 }
 0x475   : > { %v4487_v24 = vpack.c.bf16 %v3432_v20, %v3426_v18  ;;  %v3383_v25 = vadd.f32 %v3382_v23, %v5343_v46  ;;  %v3384_v26 = vpop.f32.mrb[49].mxu0 }
 0x476   : > { %v3385_v33 = vadd.f32 %v3384_v26, %v5343_v46  ;;  %4472 = vmatprep.subr.bf16.mxu1 %v4471_v21  ;;  %v3583_v46 = vld [vmem:[%s5499_s9 + $0x20] sm:$0xff] }
 0x477   : > { %v3433_v35 = vmax.f32 %v3383_v25, 0.0  ;;  %4474 = vmatpush3.bf16.msra.mxu1 %v5355_v5  ;;  %v3584_v5 = vld [vmem:[%s5499_s9 + $0x28] sm:$0xff] }
 0x478   : > { %v3434_v37 = vmax.f32 %v3385_v33, 0.0  ;;  %4476 = vmatprep.subr.bf16.mxu1 %v5379_v56  ;;  %v3638_v56 = vpop.permute.xlu0 %3637 }
 0x479   : > { %v4503_v38 = vpack.c.bf16 %v3433_v35, %v3427_v34 }
 0x47a   : > { %v4519_v30 = vpack.c.bf16 %v3434_v37, %v3428_v36 }
 0x47b   : > { %4478 = vmatpush3.bf16.msra.mxu1 %v5350_v59  ;;  %4504 = vmatprep.subr.bf16.mxu0 %v4503_v38  ;;  %v3582_v59 = vld [vmem:[%s5499_s9 + $0x18] sm:$0xff] }
 0x47c   : > { %4480 = vmatprep.subr.bf16.mxu1 %v5392_v16  ;;  %4506 = vmatpush3.bf16.msra.mxu0 %v4503_v38 }
 0x47d   : > { %4508 = vmatprep.subr.bf16.mxu0 %v5388_v29 }
 0x47f   : > { %4482 = vmatpush3.bf16.msra.mxu1 %v5366_v22 }
 0x480   : > { %4484 = vmatprep.subr.bf16.mxu1 %v4483_v60  ;;  %4510 = vmatpush3.bf16.msra.mxu0 %v5388_v29 }
 0x481   : > { %4512 = vmatprep.subr.bf16.mxu0 %v5401_v0 }
 0x483   : > { %4486 = vmatpush3.bf16.msra.mxu1 %v5371_v27 }
 0x484   : > { %4488 = vmatprep.subr.bf16.mxu1 %v4487_v24  ;;  %4514 = vmatpush3.bf16.msra.mxu0 %v5401_v0 }
 0x485   : > { %4516 = vmatprep.subr.bf16.mxu0 %v4515_v32 }
 0x487   : > { %4490 = vmatpush3.bf16.msra.mxu1 %v5358_v8 }
 0x488   : > { %4518 = vmatpush3.bf16.msra.mxu0 %v4515_v32 }
 0x489   : > { %4520 = vmatprep.subr.bf16.mxu0 %v4519_v30 }
 0x48a   : > { %3710 = vmatmul.mubr.f32.vlgmr.msra.gmra.mrb[46].mxu1 %v3579_v44 }
 0x48b   : > { %3714 = vmatprep.mubr.f32.mxu1 %v3583_v46 }
 0x48c   : > { %4522 = vmatpush3.bf16.msra.mxu0 %v4519_v30 }
 0x48e   : > { %3715 = vmatmul.mubr.f32.gmra.mrb[48].mxu1 %v3582_v59 }
 0x48f   : > { %4025 = vmatmul.mubr.f32.vlgmr.msra.gmra.mrb[50].mxu0 %v3584_v5 }
 0x55d   : > { %v3968_v8 = vpop.f32.mrb[46].mxu1 }
 0x55e   : > { %v3969_v22 = vpop.f32.mrb[47].mxu1 }
 0x55f   : > { %v3970_v27 = vadd.f32 %v3969_v22, %v3968_v8 }
 0x561   : > { %v3971_v29 = vpop.f32.mrb[48].mxu1  ;;  %v3712_v16 = vadd.f32 %v3970_v27, %v3638_v56 }
 0x562   : > { %v3972_v39 = vpop.f32.mrb[49].mxu1  ;;  %v4026_v40 = vpop.f32.mrb[50].mxu0 }
 0x563   : > { %v3973_v41 = vadd.f32 %v3972_v39, %v3971_v29  ;;  %v3786_v42 = vpop.f32.mrb[51].mxu0 }
 0x564   : > { %v3787_v45 = vadd.f32 %v3786_v42, %v3712_v16 }
 0x565   : > { %v3717_v47 = vadd.f32 %v3973_v41, %v3643_v43 }
 0x566   : > { %3795 = vst [vmem:[%s404_s25] sm:$0xff] %v3787_v45 }
 0x567   : > { %v3792_v48 = vadd.f32 %v4026_v40, %v3717_v47 }
 0x569   : > { %3796 = vst [vmem:[%s404_s25 + $0x8] sm:$0xff] %v3792_v48 }
 0x56a   : > { %4630 = shalt.err (!%p4627_p2)
}
 0x56b   : > { %s4631_s27 = scalar_lea.hbm %s5446_s19, 256  ;;  %s4635_s25 = scalar_lea.hbm %s5501_s11, 512 }
 0x56c   : > { %p4632_p4 = scmp.ne.s32.totalorder %s5446_s19, %s4631_s27  ;;  %p4636_p9 = scmp.lt.u32.totalorder %s5446_s19, %s5501_s11 }
 0x56d   : > { %p4637_p1 = scmp.lt.u32.totalorder %s4635_s25, %s4631_s27  ;;  %p4639_p6 = scmp.lt.u32.totalorder %s4631_s27, %s5446_s19 }
 0x56e   : > { %p4633_p5 = pnand %p4632_p4, %p5515_p11 }
 0x56f   : > { %p4638_p3 = por %p4637_p1, %p4636_p9 }
 0x570   : > { %p4634_p7 = pneg %p4633_p5 }
 0x571   : > { %p4640_p12 = por %p4639_p6, %p4638_p3 }
 0x573   : > { %p4641_p13 = pnand %p4640_p12, %p4634_p7 }
 0x575   : > { %4644 = shalt.err (!%p4641_p13)
}
 0x576   : > { %s4692_s30 = smov 128   ;;  %s4693_s14 = smov 8  }
 0x577   : > { %4534 = dma.vmem_to_hbm [thread:$0]  (%p5515_p11), %s5441_s13, 256, %s5446_s19, %s3798_s29, %s4692_s30, %s4692_s30, %s4693_s14  }
 0x578 PF: > { %s5516_s21 = sld [smem:[#allocation15_spill]]  ;;  %s3826_s15 = sand.u32 1, %s4671_s17  }
 0x579   : > { %p5518_p10 = scmp.ge.s32.totalorder %s4683_s20, 2  ;;  %s3827_s26 = scalar_lea.sflag [#allocation8], %s3826_s15 }
 0x57e   : > { %p5517_p8 = scmp.ne.s32.totalorder %s5516_s21, 0 }
 0x580   : > { %p4541_p0 = pnand %p5518_p10, %p5517_p8 }
 0x582   : > { %4666 = dma.done.wait (!%p4541_p0), %s3827_s26, 256  }
 0x583   : > { %4668 = vsyncadd (!%p4541_p0), %s3827_s26, 4294967040  ;;  %s5519_s20 = sld [smem:[#allocation13_spill]]  ;;  %s5520_s27 = sld [smem:[#allocation12_spill]] }
 0x584   : > { %s5521_s19 = sld [smem:[#allocation14_spill]]  ;;  %s5522_s17 = smov %s4675_s18 }
 0x589   : > { %p24_p2 = scmp.ge.s32.totalorder %s5519_s20, 4   ;;  %s5523_s18 = smov %s5520_s27 }
 0x58b   :  { %26 = sbr.rel (!%p24_p2) target bundleno = 5 (0x5), region = 109 }
 0x592   :  { %3832 = vsyncpa [#allocation7], 1 }
 0x593   :  { %3834 = vsyncpa [#allocation7 + $0x1], 1 }
 0x594   :  { %3835 = vsyncpa [#allocation8], 1 }
 0x595   :  { %3837 = vsyncpa [#allocation8 + $0x1], 1 }

</bundles_post_ra>
